<compile_context>
chip_gen: v6e
topology: v6e:2x2x1
jax: 0.10.0
libtpu: 0.0.40
codegen_flags: <defaults>
</compile_context>

<pallas_src>
import functools

import jax
import jax.numpy as jnp
from jax import lax
from jax.experimental import pallas as pl
from jax.experimental.pallas import tpu as pltpu

_EPS = 1e-5


# ---------------------------------------------------------------------------
# In-kernel helpers (one batch element; activations are (D, H*W*C) float32)
# ---------------------------------------------------------------------------
def _norm_relu(y, p_mat, gamma_t, beta_t, inv_n):
    """InstanceNorm (biased var over D*H*W per channel) + affine + ReLU.

    y       : (D, H*W*C) f32, channels interleaved along the lane axis.
    p_mat   : (H*W*C, H*W*C) f32 with p_mat[i, j] = (i % C == j % C).  One
              matmul both reduces the per-lane column sums over all (h, w)
              positions of a channel and broadcasts the per-channel statistic
              back to the tiled lane layout.
    gamma_t, beta_t : (1, H*W*C) f32, channel parameters pre-tiled over (H, W).
    inv_n   : 1 / (D*H*W).
    """
    s1 = jnp.sum(y, axis=0, keepdims=True)                           # (1, HWC)
    mean_t = jnp.dot(s1, p_mat, preferred_element_type=jnp.float32) * inv_n
    diff = y - mean_t
    s2 = jnp.sum(diff * diff, axis=0, keepdims=True)                 # (1, HWC)
    var_t = jnp.dot(s2, p_mat, preferred_element_type=jnp.float32) * inv_n
    yn = diff * lax.rsqrt(var_t + _EPS) * gamma_t + beta_t
    return jnp.maximum(yn, 0.0)


def _conv3d_same(pad_ref, y, wb_ref, bias_t, *, D, K):
    """'same' (zero) padded stride-1 Conv3d on one sample.

    y      : (D, H*W*C) f32 conv input (already normalized + ReLU'd).
    wb_ref : (K, H*W*C, H*W*C) banded weight matrices (kh, kw and Cin folded
             into the contraction axis; built in the wrapper) in the MXU
             input dtype.
    bias_t : (1, H*W*C) f32 conv bias pre-tiled over (H, W).

    Writes y into the interior of the persistent zero-D-halo pad buffer, then
    accumulates K matmuls (one per kd tap) with contraction depth H*W*C.
    The H/W zero padding is encoded in the banded weight matrices.
    """
    p = (K - 1) // 2
    HWC = y.shape[1]

    # Interior write; the 2*p D-halo rows stay zero (maintained by the caller).
    pad_ref[pl.ds(p, D), :] = y

    acc = jnp.zeros((D, HWC), jnp.float32)
    for kd in range(K):                                   # static taps (K small)
        slab = pad_ref[pl.ds(kd, D), :].astype(wb_ref.dtype)
        acc = acc + jnp.dot(slab, wb_ref[kd],
                            preferred_element_type=jnp.float32)
    return acc + bias_t


def _residual_block_kernel(x_ref, p_ref,
                           g1_ref, b1_ref, wb1_ref, cb1_ref,
                           g2_ref, b2_ref, wb2_ref, cb2_ref,
                           out_ref, pad_ref, *, D, H, W, C, K):
    p = (K - 1) // 2
    HWC = H * W * C
    inv_n = 1.0 / float(D * H * W)

    # Re-zero only the 2*p thin D-halo rows (the interior is fully overwritten
    # by every conv).  Not gated on program_id so it stays correct if the
    # parallel batch axis is split across TensorCores (each core has its own
    # scratch).
    if p:
        zero_halo = jnp.zeros((p, HWC), jnp.float32)
        pad_ref[pl.ds(0, p), :] = zero_halo
        pad_ref[pl.ds(p + D, p), :] = zero_halo

    p_mat = p_ref[...]

    z = _norm_relu(x_ref[...].astype(jnp.float32), p_mat,
                   g1_ref[...], b1_ref[...], inv_n)
    z = _conv3d_same(pad_ref, z, wb1_ref, cb1_ref[...], D=D, K=K)
    z = _norm_relu(z, p_mat, g2_ref[...], b2_ref[...], inv_n)
    z = _conv3d_same(pad_ref, z, wb2_ref, cb2_ref[...], D=D, K=K)

    # Residual: re-read x from VMEM instead of holding it live across both convs.
    out_ref[...] = (x_ref[...].astype(jnp.float32) + z).astype(out_ref.dtype)


# ---------------------------------------------------------------------------
# Wrapper-side weight / parameter packing
# ---------------------------------------------------------------------------
def _pack_conv_weight(w_dhwio, H, W, matmul_dtype):
    """(K, K, K, Cin, Cout) -> (K, H*W*Cin, H*W*Cout) banded matrices.

    For each kd:
      wb[kd][(h', w', ci), (h, w, co)] = w[kd, h'-h+p, w'-w+p, ci, co]
    when both kernel offsets are in [0, K) (and h', w' in range), else 0.
    Out-of-range H/W taps simply have no entry, which reproduces zero 'same'
    padding along H and W.  Built as sum_kh kron(H-band(kh), W-band(kd, kh)).
    """
    K = w_dhwio.shape[0]
    Cin, Cout = w_dhwio.shape[3], w_dhwio.shape[4]
    p = (K - 1) // 2
    kd_blocks = []
    for kd in range(K):
        acc = jnp.zeros((H * W * Cin, H * W * Cout), jnp.float32)
        for kh in range(K):
            # (W*Cin, W*Cout) band over kw for this (kd, kh) tap pair.
            m = jnp.zeros((W, Cin, W, Cout), jnp.float32)
            for kw in range(K):
                start = max(0, p - kw)
                stop = min(W, W + p - kw)
                if stop <= start:
                    continue
                w_out = jnp.arange(start, stop)
                w_in = w_out + (kw - p)
                upd = jnp.broadcast_to(w_dhwio[kd, kh, kw],
                                       (stop - start, Cin, Cout))
                m = m.at[w_in, :, w_out, :].add(upd)
            wband = m.reshape(W * Cin, W * Cout)
            # H-band indicator: [h', h] = 1 iff h' - h == kh - p.
            hband = jnp.eye(H, k=p - kh, dtype=jnp.float32)
            acc = acc + jnp.kron(hband, wband)
        kd_blocks.append(acc)
    return jnp.stack(kd_blocks, axis=0).astype(matmul_dtype)


# ---------------------------------------------------------------------------
# Forward wrappers
# ---------------------------------------------------------------------------
def residual_block_forward_ndhwc(x_ndhwc, params, kernel_size,
                                 matmul_dtype=jnp.bfloat16):
    """Channels-last entry point (preferred: no layout transposes needed)."""
    K = kernel_size
    assert K % 2 == 1, "'same' padding only matches PyTorch Conv3d for odd K"
    g1, b1, w1, cb1, g2, b2, w2, cb2 = params
    N, D, H, W, C = x_ndhwc.shape
    assert w1.shape[-1] == C and w2.shape[-1] == C, "residual needs Cout == Cin"

    p = (K - 1) // 2
    HWC = H * W * C
    Dp = D + 2 * p

    # ---- host/XLA-side packing (layout plumbing, traced once under jit) ----
    x2 = x_ndhwc.reshape(N, D, HWC)              # collapse (H, W, C) on lanes

    lanes = jnp.arange(HWC)
    p_mat = (lanes[:, None] % C == lanes[None, :] % C).astype(jnp.float32)

    def tile_c(v):                               # per-channel -> (1, H*W*C)
        return jnp.tile(jnp.reshape(v, (1, C)), (1, H * W)).astype(jnp.float32)

    wb1 = _pack_conv_weight(w1, H, W, matmul_dtype)
    wb2 = _pack_conv_weight(w2, H, W, matmul_dtype)

    kernel = functools.partial(_residual_block_kernel, D=D, H=H, W=W, C=C, K=K)

    def vec_spec():
        return pl.BlockSpec((1, HWC), lambda n: (0, 0))

    grid_spec = pltpu.PrefetchScalarGridSpec(
        num_scalar_prefetch=0,
        grid=(N,),
        in_specs=[
            pl.BlockSpec((None, D, HWC), lambda n: (n, 0, 0)),      # x
            pl.BlockSpec((HWC, HWC), lambda n: (0, 0)),             # p_mat
            vec_spec(), vec_spec(),                                 # g1, b1
            pl.BlockSpec((K, HWC, HWC), lambda n: (0, 0, 0)),       # wb1
            vec_spec(),                                             # cb1
            vec_spec(), vec_spec(),                                 # g2, b2
            pl.BlockSpec((K, HWC, HWC), lambda n: (0, 0, 0)),       # wb2
            vec_spec(),                                             # cb2
        ],
        out_specs=pl.BlockSpec((None, D, HWC), lambda n: (n, 0, 0)),
        scratch_shapes=[pltpu.VMEM((Dp, HWC), jnp.float32)],        # D-halo pad
    )

    out2 = pl.pallas_call(
        kernel,
        out_shape=jax.ShapeDtypeStruct((N, D, HWC), x_ndhwc.dtype),
        grid_spec=grid_spec,
        compiler_params=pltpu.CompilerParams(
            dimension_semantics=("parallel",),
            vmem_limit_bytes=32 * 1024 * 1024),
    )(x2, p_mat,
      tile_c(g1), tile_c(b1), wb1, tile_c(cb1),
      tile_c(g2), tile_c(b2), wb2, tile_c(cb2))

    return out2.reshape(N, D, H, W, C)


def residual_block_forward(x_ncdhw, params, kernel_size,
                           matmul_dtype=jnp.bfloat16):
    """PyTorch-parity entry point (NCDHW).

    The two transposes are a full HBM read+write pass each; keep the
    surrounding model channels-last and call residual_block_forward_ndhwc
    directly to avoid them.
    """
    x = jnp.transpose(x_ncdhw, (0, 2, 3, 4, 1))       # NCDHW -> NDHWC
    out = residual_block_forward_ndhwc(x, params, kernel_size, matmul_dtype)
    return jnp.transpose(out, (0, 4, 1, 2, 3))        # NDHWC -> NCDHW


# ---------------------------------------------------------------------------
# Pure-JAX reference (for correctness check)
# ---------------------------------------------------------------------------
def reference_forward(x_ncdhw, params, kernel_size):
    g1, b1, w1, cb1, g2, b2, w2, cb2 = params
    x = jnp.transpose(x_ncdhw, (0, 2, 3, 4, 1)).astype(jnp.float32)

    def inorm_relu(y, g, b):
        mean = jnp.mean(y, axis=(1, 2, 3), keepdims=True)
        var = jnp.mean((y - mean) ** 2, axis=(1, 2, 3), keepdims=True)
        return jax.nn.relu((y - mean) * lax.rsqrt(var + _EPS) * g + b)

    def conv(y, w, cb):
        out = lax.conv_general_dilated(
            y, w, window_strides=(1, 1, 1), padding="SAME",
            dimension_numbers=("NDHWC", "DHWIO", "NDHWC"))
        return out + cb

    z = conv(inorm_relu(x, g1, b1), w1, cb1)
    z = conv(inorm_relu(z, g2, b2), w2, cb2)
    return jnp.transpose(x + z, (0, 4, 1, 2, 3))


# ---------------------------------------------------------------------------
if __name__ == "__main__":
    key = jax.random.PRNGKey(0)
    N, C, D, H, W = 2, 4, 8, 8, 8
    K = 3  # kernel_size, 'same' padding

    ks = jax.random.split(key, 9)
    x = jax.random.normal(ks[0], (N, C, D, H, W), jnp.float32)   # NCDHW (PyTorch)

    g1 = 1.0 + 0.1 * jax.random.normal(ks[1], (C,), jnp.float32)
    b1 = 0.1 * jax.random.normal(ks[2], (C,), jnp.float32)
    w1 = 0.1 * jax.random.normal(ks[3], (K, K, K, C, C), jnp.float32)   # DHWIO
    cb1 = 0.1 * jax.random.normal(ks[4], (C,), jnp.float32)
    g2 = 1.0 + 0.1 * jax.random.normal(ks[5], (C,), jnp.float32)
    b2 = 0.1 * jax.random.normal(ks[6], (C,), jnp.float32)
    w2 = 0.1 * jax.random.normal(ks[7], (K, K, K, C, C), jnp.float32)   # DHWIO
    cb2 = 0.1 * jax.random.normal(ks[8], (C,), jnp.float32)
    params = (g1, b1, w1, cb1, g2, b2, w2, cb2)

    fwd = jax.jit(residual_block_forward,
                  static_argnames=("kernel_size", "matmul_dtype"))

    out_bf16 = jax.block_until_ready(fwd(x, params, kernel_size=K))
    out_f32 = jax.block_until_ready(
        fwd(x, params, kernel_size=K, matmul_dtype=jnp.float32))
    ref = jax.block_until_ready(reference_forward(x, params, K))

    assert out_bf16.shape == x.shape and out_bf16.dtype == x.dtype
    err_f32 = float(jnp.max(jnp.abs(out_f32 - ref)))
    err_bf16 = float(jnp.max(jnp.abs(out_bf16 - ref)))
    assert err_f32 < 1e-3, f"f32-MXU max abs err {err_f32}"
    assert err_bf16 < 5e-2, f"bf16-MXU max abs err {err_bf16}"
    print("KERNEL_OK")
</pallas_src>

<mosaic_0001>
module attributes {stable_mosaic.version = 11 : i64} {
  func.func @_residual_block_kernel(%arg0: i32, %arg1: memref<1x8x256xf32, #tpu.memory_space<vmem>>, %arg2: memref<256x256xf32, #tpu.memory_space<vmem>>, %arg3: memref<1x256xf32, #tpu.memory_space<vmem>>, %arg4: memref<1x256xf32, #tpu.memory_space<vmem>>, %arg5: memref<3x256x256xbf16, #tpu.memory_space<vmem>>, %arg6: memref<1x256xf32, #tpu.memory_space<vmem>>, %arg7: memref<1x256xf32, #tpu.memory_space<vmem>>, %arg8: memref<1x256xf32, #tpu.memory_space<vmem>>, %arg9: memref<3x256x256xbf16, #tpu.memory_space<vmem>>, %arg10: memref<1x256xf32, #tpu.memory_space<vmem>>, %arg11: memref<1x8x256xf32, #tpu.memory_space<vmem>>, %arg12: memref<10x256xf32, #tpu.memory_space<vmem>>) attributes {dimension_semantics = [#tpu.dimension_semantics<parallel>], iteration_bounds = array<i64: 2>, scalar_prefetch = 0 : i64, scratch_operands = 1 : i64, tpu.core_type = #tpu.core_type<tc>, window_params = [{transform_indices = @transform_0, window_bounds = array<i64: 1, 8, 256>}, {pipeline_mode = #tpu.pipeline_mode<synchronous>, transform_indices = @transform_1, window_bounds = array<i64: 256, 256>}, {pipeline_mode = #tpu.pipeline_mode<synchronous>, transform_indices = @transform_2, window_bounds = array<i64: 1, 256>}, {pipeline_mode = #tpu.pipeline_mode<synchronous>, transform_indices = @transform_3, window_bounds = array<i64: 1, 256>}, {pipeline_mode = #tpu.pipeline_mode<synchronous>, transform_indices = @transform_4, window_bounds = array<i64: 3, 256, 256>}, {pipeline_mode = #tpu.pipeline_mode<synchronous>, transform_indices = @transform_5, window_bounds = array<i64: 1, 256>}, {pipeline_mode = #tpu.pipeline_mode<synchronous>, transform_indices = @transform_6, window_bounds = array<i64: 1, 256>}, {pipeline_mode = #tpu.pipeline_mode<synchronous>, transform_indices = @transform_7, window_bounds = array<i64: 1, 256>}, {pipeline_mode = #tpu.pipeline_mode<synchronous>, transform_indices = @transform_8, window_bounds = array<i64: 3, 256, 256>}, {pipeline_mode = #tpu.pipeline_mode<synchronous>, transform_indices = @transform_9, window_bounds = array<i64: 1, 256>}, {transform_indices = @transform_10, window_bounds = array<i64: 1, 8, 256>}]} {
    %cst = arith.constant 0.000000e+00 : f32
    %0 = vector.broadcast %cst : f32 to vector<1x256xf32>
    %c0 = arith.constant 0 : index
    %c0_0 = arith.constant 0 : index
    %1 = vector.load %arg12[%c0, %c0_0] : memref<10x256xf32, #tpu.memory_space<vmem>>, vector<1x256xf32>
    tpu.vector_store %arg12[%c0, %c0_0], %0 {strides = array<i32>} : memref<10x256xf32, #tpu.memory_space<vmem>>, vector<1x256xf32>,
    %c9 = arith.constant 9 : index
    %c0_1 = arith.constant 0 : index
    %2 = vector.load %arg12[%c9, %c0_1] : memref<10x256xf32, #tpu.memory_space<vmem>>, vector<1x256xf32>
    tpu.vector_store %arg12[%c9, %c0_1], %0 {strides = array<i32>} : memref<10x256xf32, #tpu.memory_space<vmem>>, vector<1x256xf32>,
    %c0_2 = arith.constant 0 : index
    %c0_3 = arith.constant 0 : index
    %3 = vector.load %arg2[%c0_2, %c0_3] : memref<256x256xf32, #tpu.memory_space<vmem>>, vector<256x256xf32>
    %c0_4 = arith.constant 0 : index
    %c0_5 = arith.constant 0 : index
    %c0_6 = arith.constant 0 : index
    %4 = vector.load %arg1[%c0_4, %c0_5, %c0_6] : memref<1x8x256xf32, #tpu.memory_space<vmem>>, vector<1x8x256xf32>
    %5 = vector.shape_cast %4 : vector<1x8x256xf32> to vector<8x256xf32>
    %c0_7 = arith.constant 0 : index
    %c0_8 = arith.constant 0 : index
    %6 = vector.load %arg3[%c0_7, %c0_8] : memref<1x256xf32, #tpu.memory_space<vmem>>, vector<1x256xf32>
    %c0_9 = arith.constant 0 : index
    %c0_10 = arith.constant 0 : index
    %7 = vector.load %arg4[%c0_9, %c0_10] : memref<1x256xf32, #tpu.memory_space<vmem>>, vector<1x256xf32>
    %cst_11 = arith.constant dense<0.000000e+00> : vector<256xf32>
    %8 = vector.multi_reduction <add>, %5, %cst_11 [0] : vector<8x256xf32> to vector<256xf32>
    %9 = vector.shape_cast %8 : vector<256xf32> to vector<1x256xf32>
    %cst_12 = arith.constant dense<0.000000e+00> : vector<1x256xf32>
    %10 = tpu.matmul %9, %3, %cst_12 {dimension_numbers = #tpu.dot_dimension_numbers<[1], [0], [0], [1], [0, 0, 1, 1], [], []>} : vector<1x256xf32>, vector<256x256xf32>, vector<1x256xf32> -> vector<1x256xf32>
    %cst_13 = arith.constant 0.001953125 : f32
    %11 = vector.broadcast %cst_13 : f32 to vector<1x256xf32>
    %12 = arith.mulf %10, %11 : vector<1x256xf32>
    %13 = vector.broadcast %12 : vector<1x256xf32> to vector<8x256xf32>
    %14 = arith.subf %5, %13 : vector<8x256xf32>
    %15 = arith.mulf %14, %14 : vector<8x256xf32>
    %cst_14 = arith.constant dense<0.000000e+00> : vector<256xf32>
    %16 = vector.multi_reduction <add>, %15, %cst_14 [0] : vector<8x256xf32> to vector<256xf32>
    %17 = vector.shape_cast %16 : vector<256xf32> to vector<1x256xf32>
    %cst_15 = arith.constant dense<0.000000e+00> : vector<1x256xf32>
    %18 = tpu.matmul %17, %3, %cst_15 {dimension_numbers = #tpu.dot_dimension_numbers<[1], [0], [0], [1], [0, 0, 1, 1], [], []>} : vector<1x256xf32>, vector<256x256xf32>, vector<1x256xf32> -> vector<1x256xf32>
    %cst_16 = arith.constant 0.001953125 : f32
    %19 = vector.broadcast %cst_16 : f32 to vector<1x256xf32>
    %20 = arith.mulf %18, %19 : vector<1x256xf32>
    %cst_17 = arith.constant 9.99999974E-6 : f32
    %21 = vector.broadcast %cst_17 : f32 to vector<1x256xf32>
    %22 = arith.addf %20, %21 : vector<1x256xf32>
    %23 = math.rsqrt %22 : vector<1x256xf32>
    %24 = vector.broadcast %23 : vector<1x256xf32> to vector<8x256xf32>
    %25 = arith.mulf %14, %24 : vector<8x256xf32>
    %26 = vector.broadcast %6 : vector<1x256xf32> to vector<8x256xf32>
    %27 = arith.mulf %25, %26 : vector<8x256xf32>
    %28 = vector.broadcast %7 : vector<1x256xf32> to vector<8x256xf32>
    %29 = arith.addf %27, %28 : vector<8x256xf32>
    %cst_18 = arith.constant 0.000000e+00 : f32
    %30 = vector.broadcast %cst_18 : f32 to vector<8x256xf32>
    %31 = arith.maximumf %29, %30 : vector<8x256xf32>
    %c0_19 = arith.constant 0 : index
    %c0_20 = arith.constant 0 : index
    %32 = vector.load %arg6[%c0_19, %c0_20] : memref<1x256xf32, #tpu.memory_space<vmem>>, vector<1x256xf32>
    %c1 = arith.constant 1 : index
    %c0_21 = arith.constant 0 : index
    %33 = vector.load %arg12[%c1, %c0_21] : memref<10x256xf32, #tpu.memory_space<vmem>>, vector<8x256xf32>
    tpu.vector_store %arg12[%c1, %c0_21], %31 {strides = array<i32>} : memref<10x256xf32, #tpu.memory_space<vmem>>, vector<8x256xf32>,
    %cst_22 = arith.constant 0.000000e+00 : f32
    %34 = vector.broadcast %cst_22 : f32 to vector<8x256xf32>
    %c0_23 = arith.constant 0 : index
    %c0_24 = arith.constant 0 : index
    %35 = vector.load %arg12[%c0_23, %c0_24] : memref<10x256xf32, #tpu.memory_space<vmem>>, vector<8x256xf32>
    %36 = arith.truncf %35 : vector<8x256xf32> to vector<8x256xbf16>
    %c0_25 = arith.constant 0 : index
    %c0_26 = arith.constant 0 : index
    %c0_27 = arith.constant 0 : index
    %37 = vector.load %arg5[%c0_25, %c0_26, %c0_27] : memref<3x256x256xbf16, #tpu.memory_space<vmem>>, vector<1x256x256xbf16>
    %38 = vector.shape_cast %37 : vector<1x256x256xbf16> to vector<256x256xbf16>
    %cst_28 = arith.constant dense<0.000000e+00> : vector<8x256xf32>
    %39 = tpu.matmul %36, %38, %cst_28 {dimension_numbers = #tpu.dot_dimension_numbers<[1], [0], [0], [1], [0, 0, 1, 1], [], []>} : vector<8x256xbf16>, vector<256x256xbf16>, vector<8x256xf32> -> vector<8x256xf32>
    %40 = arith.addf %34, %39 : vector<8x256xf32>
    %c1_29 = arith.constant 1 : index
    %c0_30 = arith.constant 0 : index
    %41 = vector.load %arg12[%c1_29, %c0_30] : memref<10x256xf32, #tpu.memory_space<vmem>>, vector<8x256xf32>
    %42 = arith.truncf %41 : vector<8x256xf32> to vector<8x256xbf16>
    %c1_31 = arith.constant 1 : index
    %c0_32 = arith.constant 0 : index
    %c0_33 = arith.constant 0 : index
    %43 = vector.load %arg5[%c1_31, %c0_32, %c0_33] : memref<3x256x256xbf16, #tpu.memory_space<vmem>>, vector<1x256x256xbf16>
    %44 = vector.shape_cast %43 : vector<1x256x256xbf16> to vector<256x256xbf16>
    %cst_34 = arith.constant dense<0.000000e+00> : vector<8x256xf32>
    %45 = tpu.matmul %42, %44, %cst_34 {dimension_numbers = #tpu.dot_dimension_numbers<[1], [0], [0], [1], [0, 0, 1, 1], [], []>} : vector<8x256xbf16>, vector<256x256xbf16>, vector<8x256xf32> -> vector<8x256xf32>
    %46 = arith.addf %40, %45 : vector<8x256xf32>
    %c2 = arith.constant 2 : index
    %c0_35 = arith.constant 0 : index
    %47 = vector.load %arg12[%c2, %c0_35] : memref<10x256xf32, #tpu.memory_space<vmem>>, vector<8x256xf32>
    %48 = arith.truncf %47 : vector<8x256xf32> to vector<8x256xbf16>
    %c2_36 = arith.constant 2 : index
    %c0_37 = arith.constant 0 : index
    %c0_38 = arith.constant 0 : index
    %49 = vector.load %arg5[%c2_36, %c0_37, %c0_38] : memref<3x256x256xbf16, #tpu.memory_space<vmem>>, vector<1x256x256xbf16>
    %50 = vector.shape_cast %49 : vector<1x256x256xbf16> to vector<256x256xbf16>
    %cst_39 = arith.constant dense<0.000000e+00> : vector<8x256xf32>
    %51 = tpu.matmul %48, %50, %cst_39 {dimension_numbers = #tpu.dot_dimension_numbers<[1], [0], [0], [1], [0, 0, 1, 1], [], []>} : vector<8x256xbf16>, vector<256x256xbf16>, vector<8x256xf32> -> vector<8x256xf32>
    %52 = arith.addf %46, %51 : vector<8x256xf32>
    %53 = vector.broadcast %32 : vector<1x256xf32> to vector<8x256xf32>
    %54 = arith.addf %52, %53 : vector<8x256xf32>
    %c0_40 = arith.constant 0 : index
    %c0_41 = arith.constant 0 : index
    %55 = vector.load %arg7[%c0_40, %c0_41] : memref<1x256xf32, #tpu.memory_space<vmem>>, vector<1x256xf32>
    %c0_42 = arith.constant 0 : index
    %c0_43 = arith.constant 0 : index
    %56 = vector.load %arg8[%c0_42, %c0_43] : memref<1x256xf32, #tpu.memory_space<vmem>>, vector<1x256xf32>
    %cst_44 = arith.constant dense<0.000000e+00> : vector<256xf32>
    %57 = vector.multi_reduction <add>, %54, %cst_44 [0] : vector<8x256xf32> to vector<256xf32>
    %58 = vector.shape_cast %57 : vector<256xf32> to vector<1x256xf32>
    %cst_45 = arith.constant dense<0.000000e+00> : vector<1x256xf32>
    %59 = tpu.matmul %58, %3, %cst_45 {dimension_numbers = #tpu.dot_dimension_numbers<[1], [0], [0], [1], [0, 0, 1, 1], [], []>} : vector<1x256xf32>, vector<256x256xf32>, vector<1x256xf32> -> vector<1x256xf32>
    %cst_46 = arith.constant 0.001953125 : f32
    %60 = vector.broadcast %cst_46 : f32 to vector<1x256xf32>
    %61 = arith.mulf %59, %60 : vector<1x256xf32>
    %62 = vector.broadcast %61 : vector<1x256xf32> to vector<8x256xf32>
    %63 = arith.subf %54, %62 : vector<8x256xf32>
    %64 = arith.mulf %63, %63 : vector<8x256xf32>
    %cst_47 = arith.constant dense<0.000000e+00> : vector<256xf32>
    %65 = vector.multi_reduction <add>, %64, %cst_47 [0] : vector<8x256xf32> to vector<256xf32>
    %66 = vector.shape_cast %65 : vector<256xf32> to vector<1x256xf32>
    %cst_48 = arith.constant dense<0.000000e+00> : vector<1x256xf32>
    %67 = tpu.matmul %66, %3, %cst_48 {dimension_numbers = #tpu.dot_dimension_numbers<[1], [0], [0], [1], [0, 0, 1, 1], [], []>} : vector<1x256xf32>, vector<256x256xf32>, vector<1x256xf32> -> vector<1x256xf32>
    %cst_49 = arith.constant 0.001953125 : f32
    %68 = vector.broadcast %cst_49 : f32 to vector<1x256xf32>
    %69 = arith.mulf %67, %68 : vector<1x256xf32>
    %cst_50 = arith.constant 9.99999974E-6 : f32
    %70 = vector.broadcast %cst_50 : f32 to vector<1x256xf32>
    %71 = arith.addf %69, %70 : vector<1x256xf32>
    %72 = math.rsqrt %71 : vector<1x256xf32>
    %73 = vector.broadcast %72 : vector<1x256xf32> to vector<8x256xf32>
    %74 = arith.mulf %63, %73 : vector<8x256xf32>
    %75 = vector.broadcast %55 : vector<1x256xf32> to vector<8x256xf32>
    %76 = arith.mulf %74, %75 : vector<8x256xf32>
    %77 = vector.broadcast %56 : vector<1x256xf32> to vector<8x256xf32>
    %78 = arith.addf %76, %77 : vector<8x256xf32>
    %cst_51 = arith.constant 0.000000e+00 : f32
    %79 = vector.broadcast %cst_51 : f32 to vector<8x256xf32>
    %80 = arith.maximumf %78, %79 : vector<8x256xf32>
    %c0_52 = arith.constant 0 : index
    %c0_53 = arith.constant 0 : index
    %81 = vector.load %arg10[%c0_52, %c0_53] : memref<1x256xf32, #tpu.memory_space<vmem>>, vector<1x256xf32>
    %c1_54 = arith.constant 1 : index
    %c0_55 = arith.constant 0 : index
    %82 = vector.load %arg12[%c1_54, %c0_55] : memref<10x256xf32, #tpu.memory_space<vmem>>, vector<8x256xf32>
    tpu.vector_store %arg12[%c1_54, %c0_55], %80 {strides = array<i32>} : memref<10x256xf32, #tpu.memory_space<vmem>>, vector<8x256xf32>,
    %cst_56 = arith.constant 0.000000e+00 : f32
    %83 = vector.broadcast %cst_56 : f32 to vector<8x256xf32>
    %c0_57 = arith.constant 0 : index
    %c0_58 = arith.constant 0 : index
    %84 = vector.load %arg12[%c0_57, %c0_58] : memref<10x256xf32, #tpu.memory_space<vmem>>, vector<8x256xf32>
    %85 = arith.truncf %84 : vector<8x256xf32> to vector<8x256xbf16>
    %c0_59 = arith.constant 0 : index
    %c0_60 = arith.constant 0 : index
    %c0_61 = arith.constant 0 : index
    %86 = vector.load %arg9[%c0_59, %c0_60, %c0_61] : memref<3x256x256xbf16, #tpu.memory_space<vmem>>, vector<1x256x256xbf16>
    %87 = vector.shape_cast %86 : vector<1x256x256xbf16> to vector<256x256xbf16>
    %cst_62 = arith.constant dense<0.000000e+00> : vector<8x256xf32>
    %88 = tpu.matmul %85, %87, %cst_62 {dimension_numbers = #tpu.dot_dimension_numbers<[1], [0], [0], [1], [0, 0, 1, 1], [], []>} : vector<8x256xbf16>, vector<256x256xbf16>, vector<8x256xf32> -> vector<8x256xf32>
    %89 = arith.addf %83, %88 : vector<8x256xf32>
    %c1_63 = arith.constant 1 : index
    %c0_64 = arith.constant 0 : index
    %90 = vector.load %arg12[%c1_63, %c0_64] : memref<10x256xf32, #tpu.memory_space<vmem>>, vector<8x256xf32>
    %91 = arith.truncf %90 : vector<8x256xf32> to vector<8x256xbf16>
    %c1_65 = arith.constant 1 : index
    %c0_66 = arith.constant 0 : index
    %c0_67 = arith.constant 0 : index
    %92 = vector.load %arg9[%c1_65, %c0_66, %c0_67] : memref<3x256x256xbf16, #tpu.memory_space<vmem>>, vector<1x256x256xbf16>
    %93 = vector.shape_cast %92 : vector<1x256x256xbf16> to vector<256x256xbf16>
    %cst_68 = arith.constant dense<0.000000e+00> : vector<8x256xf32>
    %94 = tpu.matmul %91, %93, %cst_68 {dimension_numbers = #tpu.dot_dimension_numbers<[1], [0], [0], [1], [0, 0, 1, 1], [], []>} : vector<8x256xbf16>, vector<256x256xbf16>, vector<8x256xf32> -> vector<8x256xf32>
    %95 = arith.addf %89, %94 : vector<8x256xf32>
    %c2_69 = arith.constant 2 : index
    %c0_70 = arith.constant 0 : index
    %96 = vector.load %arg12[%c2_69, %c0_70] : memref<10x256xf32, #tpu.memory_space<vmem>>, vector<8x256xf32>
    %97 = arith.truncf %96 : vector<8x256xf32> to vector<8x256xbf16>
    %c2_71 = arith.constant 2 : index
    %c0_72 = arith.constant 0 : index
    %c0_73 = arith.constant 0 : index
    %98 = vector.load %arg9[%c2_71, %c0_72, %c0_73] : memref<3x256x256xbf16, #tpu.memory_space<vmem>>, vector<1x256x256xbf16>
    %99 = vector.shape_cast %98 : vector<1x256x256xbf16> to vector<256x256xbf16>
    %cst_74 = arith.constant dense<0.000000e+00> : vector<8x256xf32>
    %100 = tpu.matmul %97, %99, %cst_74 {dimension_numbers = #tpu.dot_dimension_numbers<[1], [0], [0], [1], [0, 0, 1, 1], [], []>} : vector<8x256xbf16>, vector<256x256xbf16>, vector<8x256xf32> -> vector<8x256xf32>
    %101 = arith.addf %95, %100 : vector<8x256xf32>
    %102 = vector.broadcast %81 : vector<1x256xf32> to vector<8x256xf32>
    %103 = arith.addf %101, %102 : vector<8x256xf32>
    %c0_75 = arith.constant 0 : index
    %c0_76 = arith.constant 0 : index
    %c0_77 = arith.constant 0 : index
    %104 = vector.load %arg1[%c0_75, %c0_76, %c0_77] : memref<1x8x256xf32, #tpu.memory_space<vmem>>, vector<1x8x256xf32>
    %105 = vector.shape_cast %104 : vector<1x8x256xf32> to vector<8x256xf32>
    %106 = arith.addf %105, %103 : vector<8x256xf32>
    %c0_78 = arith.constant 0 : index
    %c0_79 = arith.constant 0 : index
    %c0_80 = arith.constant 0 : index
    %107 = vector.load %arg11[%c0_78, %c0_79, %c0_80] : memref<1x8x256xf32, #tpu.memory_space<vmem>>, vector<1x8x256xf32>
    %108 = vector.shape_cast %107 : vector<1x8x256xf32> to vector<8x256xf32>
    %109 = vector.shape_cast %106 : vector<8x256xf32> to vector<1x8x256xf32>
    tpu.vector_store %arg11[%c0_78, %c0_79, %c0_80], %109 {strides = array<i32>} : memref<1x8x256xf32, #tpu.memory_space<vmem>>, vector<1x8x256xf32>,
    return
  }
  func.func @transform_0(%arg0: i32) -> (i32, i32, i32) {
    %c0_i32 = arith.constant 0 : i32
    %c0_i32_0 = arith.constant 0 : i32
    %c0_i32_1 = arith.constant 0 : i32
    return %arg0, %c0_i32, %c0_i32_0 : i32, i32, i32
  }
  func.func @transform_1(%arg0: i32) -> (i32, i32) {
    %c0_i32 = arith.constant 0 : i32
    %c0_i32_0 = arith.constant 0 : i32
    %c0_i32_1 = arith.constant 0 : i32
    return %c0_i32, %c0_i32_0 : i32, i32
  }
  func.func @transform_2(%arg0: i32) -> (i32, i32) {
    %c0_i32 = arith.constant 0 : i32
    %c0_i32_0 = arith.constant 0 : i32
    %c0_i32_1 = arith.constant 0 : i32
    return %c0_i32, %c0_i32_0 : i32, i32
  }
  func.func @transform_3(%arg0: i32) -> (i32, i32) {
    %c0_i32 = arith.constant 0 : i32
    %c0_i32_0 = arith.constant 0 : i32
    %c0_i32_1 = arith.constant 0 : i32
    return %c0_i32, %c0_i32_0 : i32, i32
  }
  func.func @transform_4(%arg0: i32) -> (i32, i32, i32) {
    %c0_i32 = arith.constant 0 : i32
    %c0_i32_0 = arith.constant 0 : i32
    %c0_i32_1 = arith.constant 0 : i32
    %c0_i32_2 = arith.constant 0 : i32
    return %c0_i32, %c0_i32_0, %c0_i32_1 : i32, i32, i32
  }
  func.func @transform_5(%arg0: i32) -> (i32, i32) {
    %c0_i32 = arith.constant 0 : i32
    %c0_i32_0 = arith.constant 0 : i32
    %c0_i32_1 = arith.constant 0 : i32
    return %c0_i32, %c0_i32_0 : i32, i32
  }
  func.func @transform_6(%arg0: i32) -> (i32, i32) {
    %c0_i32 = arith.constant 0 : i32
    %c0_i32_0 = arith.constant 0 : i32
    %c0_i32_1 = arith.constant 0 : i32
    return %c0_i32, %c0_i32_0 : i32, i32
  }
  func.func @transform_7(%arg0: i32) -> (i32, i32) {
    %c0_i32 = arith.constant 0 : i32
    %c0_i32_0 = arith.constant 0 : i32
    %c0_i32_1 = arith.constant 0 : i32
    return %c0_i32, %c0_i32_0 : i32, i32
  }
  func.func @transform_8(%arg0: i32) -> (i32, i32, i32) {
    %c0_i32 = arith.constant 0 : i32
    %c0_i32_0 = arith.constant 0 : i32
    %c0_i32_1 = arith.constant 0 : i32
    %c0_i32_2 = arith.constant 0 : i32
    return %c0_i32, %c0_i32_0, %c0_i32_1 : i32, i32, i32
  }
  func.func @transform_9(%arg0: i32) -> (i32, i32) {
    %c0_i32 = arith.constant 0 : i32
    %c0_i32_0 = arith.constant 0 : i32
    %c0_i32_1 = arith.constant 0 : i32
    return %c0_i32, %c0_i32_0 : i32, i32
  }
  func.func @transform_10(%arg0: i32) -> (i32, i32, i32) {
    %c0_i32 = arith.constant 0 : i32
    %c0_i32_0 = arith.constant 0 : i32
    %c0_i32_1 = arith.constant 0 : i32
    return %arg0, %c0_i32, %c0_i32_0 : i32, i32, i32
  }
}

</mosaic_0001>

<bundles_post_ra>
// kernel: mul.102
= control target key start
LH: loop header
LB: loop body
LE: loop exit
PB: predicated region body
PF: predicated region fallthrough
CT: control target
= control target key end

     0   :  { %vm4_vm0 = vcmask 1047556   ;;  %s429_s14 = smov 28   ;;  %s430_s10 = smov 24   ;;  %vm6_vm1 = vcmask 31744   ;;  %vm43_vm2 = vcmask 261344   ;;  %vm86_vm3 = vcmask 228544   ;;  %s770_s0 = inlined_call_operand.vmem [shape: f32[8,4,8,4], index: 0, kind: input, shape index: {}]   ;;  %s771_s1 = inlined_call_operand.vmem [shape: f32[32,32], index: 1, kind: output, shape index: {}]  }
   0x1   :  { %v350_v0 = vld [vmem:[%s770_s0 + $0x87] ss:$8 sm:$0xf]   ;;  %v358_v12 = vld [vmem:[%s770_s0 + $0x46] ss:$8 sm:$0xf]  }
   0x2   :  { %v351_v1 = vld [vmem:[%s770_s0 + $0x87] ss:$8 sm:$0xf0]   ;;  %v359_v13 = vld [vmem:[%s770_s0 + $0x46] ss:$8 sm:$0xf0]  }
   0x3   :  { %v61_v2 = vsel %vm4_vm0, %v351_v1, %v350_v0  ;;  %v345_v3 = vld [vmem:[%s770_s0 + $0x7] ss:$8 sm:$0xf]   ;;  %v356_v14 = vld [vmem:[%s770_s0 + $0x6] ss:$8 sm:$0xf]   ;;  %v93_v16 = vsel %vm4_vm0, %v359_v13, %v358_v12 }
   0x4   :  { %v346_v4 = vld [vmem:[%s770_s0 + $0x7] ss:$8 sm:$0xf0]   ;;  %62 = vrot.lane.b32.xlu1 %v61_v2, %s429_s14  ;;  %v357_v15 = vld [vmem:[%s770_s0 + $0x6] ss:$8 sm:$0xf0]  }
   0x5   :  { %v40_v5 = vsel %vm4_vm0, %v346_v4, %v345_v3  ;;  %v353_v6 = vld [vmem:[%s770_s0 + $0xc7] ss:$8 sm:$0xf]   ;;  %v83_v17 = vsel %vm4_vm0, %v357_v15, %v356_v14  ;;  %v364_v18 = vld [vmem:[%s770_s0 + $0xc6] ss:$8 sm:$0xf]  }
   0x6   :  { %v354_v7 = vld [vmem:[%s770_s0 + $0xc7] ss:$8 sm:$0xf0]   ;;  %41 = vrot.lane.b32.xlu0 %v40_v5, %s429_s14  ;;  %v365_v19 = vld [vmem:[%s770_s0 + $0xc6] ss:$8 sm:$0xf0]  }
   0x7   :  { %v72_v8 = vsel %vm4_vm0, %v354_v7, %v353_v6  ;;  %v347_v9 = vld [vmem:[%s770_s0 + $0x47] ss:$8 sm:$0xf]   ;;  %v361_v20 = vld [vmem:[%s770_s0 + $0x86] ss:$8 sm:$0xf]   ;;  %v115_v22 = vsel %vm4_vm0, %v365_v19, %v364_v18 }
   0x8   :  { %v348_v10 = vld [vmem:[%s770_s0 + $0x47] ss:$8 sm:$0xf0]   ;;  %73 = vrot.lane.b32.xlu1 %v72_v8, %s429_s14  ;;  %v362_v21 = vld [vmem:[%s770_s0 + $0x86] ss:$8 sm:$0xf0]  }
   0x9   :  { %v50_v11 = vsel %vm4_vm0, %v348_v10, %v347_v9  ;;  %v104_v23 = vsel %vm4_vm0, %v362_v21, %v361_v20  ;;  %v369_v24 = vld [vmem:[%s770_s0 + $0x45] ss:$8 sm:$0xf]   ;;  %s431_s27 = smov 20   ;;  %s432_s15 = smov 16   ;;  %vm129_vm4 = vcmask 195744  }
   0xa   :  { %51 = vrot.lane.b32.xlu0 %v50_v11, %s429_s14  ;;  %v370_v25 = vld [vmem:[%s770_s0 + $0x45] ss:$8 sm:$0xf0]   ;;  %v380_v36 = vld [vmem:[%s770_s0 + $0x44] ss:$8 sm:$0xf]  }
   0xb   :  { %v367_v26 = vld [vmem:[%s770_s0 + $0x5] ss:$8 sm:$0xf]   ;;  %v136_v28 = vsel %vm4_vm0, %v370_v25, %v369_v24  ;;  %v381_v37 = vld [vmem:[%s770_s0 + $0x44] ss:$8 sm:$0xf0]  }
   0xc   :  { %94 = vrot.lane.b32.xlu1 %v93_v16, %s430_s10  ;;  %v368_v27 = vld [vmem:[%s770_s0 + $0x5] ss:$8 sm:$0xf0]   ;;  %v378_v38 = vld [vmem:[%s770_s0 + $0x4] ss:$8 sm:$0xf]   ;;  %v179_v40 = vsel %vm4_vm0, %v381_v37, %v380_v36 }
   0xd   :  { %v126_v29 = vsel %vm4_vm0, %v368_v27, %v367_v26  ;;  %v375_v30 = vld [vmem:[%s770_s0 + $0xc5] ss:$8 sm:$0xf]   ;;  %v379_v39 = vld [vmem:[%s770_s0 + $0x4] ss:$8 sm:$0xf0]  }
   0xe   :  { %84 = vrot.lane.b32.xlu0 %v83_v17, %s430_s10  ;;  %v376_v31 = vld [vmem:[%s770_s0 + $0xc5] ss:$8 sm:$0xf0]   ;;  %v169_v41 = vsel %vm4_vm0, %v379_v39, %v378_v38  ;;  %v386_v42 = vld [vmem:[%s770_s0 + $0xc4] ss:$8 sm:$0xf]  }
   0xf   :  { %v372_v32 = vld [vmem:[%s770_s0 + $0x85] ss:$8 sm:$0xf]   ;;  %v158_v34 = vsel %vm4_vm0, %v376_v31, %v375_v30  ;;  %v387_v43 = vld [vmem:[%s770_s0 + $0xc4] ss:$8 sm:$0xf0]  }
  0x10   :  { %116 = vrot.lane.b32.xlu1 %v115_v22, %s430_s10  ;;  %v373_v33 = vld [vmem:[%s770_s0 + $0x85] ss:$8 sm:$0xf0]   ;;  %v383_v44 = vld [vmem:[%s770_s0 + $0x84] ss:$8 sm:$0xf]   ;;  %v201_v46 = vsel %vm4_vm0, %v387_v43, %v386_v42 }
  0x11   :  { %v147_v35 = vsel %vm4_vm0, %v373_v33, %v372_v32  ;;  %v384_v45 = vld [vmem:[%s770_s0 + $0x84] ss:$8 sm:$0xf0]   ;;  %v391_v47 = vld [vmem:[%s770_s0 + $0x43] ss:$8 sm:$0xf]  }
  0x12   :  { %105 = vrot.lane.b32.xlu0 %v104_v23, %s430_s10  ;;  %v190_v48 = vsel %vm4_vm0, %v384_v45, %v383_v44  ;;  %v392_v49 = vld [vmem:[%s770_s0 + $0x43] ss:$8 sm:$0xf0]   ;;  %v339_v52 = vld [vmem:[%s770_s0 + $0x80] ss:$8 sm:$0xf]  }
  0x13   :  { %v389_v50 = vld [vmem:[%s770_s0 + $0x3] ss:$8 sm:$0xf]   ;;  %v340_v55 = vld [vmem:[%s770_s0 + $0x80] ss:$8 sm:$0xf0]   ;;  %v222_v57 = vsel %vm4_vm0, %v392_v49, %v391_v47 }
  0x14   :  { %137 = vrot.lane.b32.xlu1 %v136_v28, %s431_s27  ;;  %v390_v51 = vld [vmem:[%s770_s0 + $0x3] ss:$8 sm:$0xf0]   ;;  %v2_v56 = vld [vmem:[%s770_s0] ss:$8 sm:$0xf]   ;;  %v22_v59 = vsel %vm4_vm0, %v340_v55, %v339_v52 }
  0x15   :  { %v397_v53 = vld [vmem:[%s770_s0 + $0xc3] ss:$8 sm:$0xf]   ;;  %v3_v60 = vld [vmem:[%s770_s0] ss:$8 sm:$0xf0]   ;;  %v212_v62 = vsel %vm4_vm0, %v390_v51, %v389_v50 }
  0x16   :  { %127 = vrot.lane.b32.xlu0 %v126_v29, %s431_s27  ;;  %v398_v54 = vld [vmem:[%s770_s0 + $0xc3] ss:$8 sm:$0xf0]   ;;  %v342_v61 = vld [vmem:[%s770_s0 + $0xc0] ss:$8 sm:$0xf]   ;;  %v5_v63 = vsel %vm4_vm0, %v3_v60, %v2_v56 }
  0x17   :  { %v394_v58 = vld [vmem:[%s770_s0 + $0x83] ss:$8 sm:$0xf]   ;;  %341 = vst.msk [vmem:[%s771_s1 + $0x10] sm:$0xff] %vm6_vm1, %v22_v59   ;;  %7 = vst.msk [vmem:[%s771_s1] sm:$0xff] %vm6_vm1, %v5_v63   ;;  %s433_s23 = smov 12   ;;  %v244_v6 = vsel %vm4_vm0, %v398_v54, %v397_v53 }
  0x18   :  { %159 = vrot.lane.b32.xlu1 %v158_v34, %s431_s27  ;;  %v343_v0 = vld [vmem:[%s770_s0 + $0xc0] ss:$8 sm:$0xf0]   ;;  %v395_v2 = vld [vmem:[%s770_s0 + $0x83] ss:$8 sm:$0xf0]  }
  0x19   :  { %v336_v1 = vld [vmem:[%s770_s0 + $0x40] ss:$8 sm:$0xf]   ;;  %v31_v3 = vsel %vm4_vm0, %v343_v0, %v342_v61  ;;  %v233_v7 = vsel %vm4_vm0, %v395_v2, %v394_v58  ;;  %v402_v8 = vld [vmem:[%s770_s0 + $0x42] ss:$8 sm:$0xf]  }
  0x1a   :  { %148 = vrot.lane.b32.xlu0 %v147_v35, %s431_s27  ;;  %v337_v4 = vld [vmem:[%s770_s0 + $0x40] ss:$8 sm:$0xf0]   ;;  %344 = vst.msk [vmem:[%s771_s1 + $0x18] sm:$0xff] %vm6_vm1, %v31_v3   ;;  %vm172_vm5 = vcmask 162944   ;;  %vm215_vm6 = vcmask 130144  }
  0x1b   :  { %v13_v5 = vsel %vm4_vm0, %v337_v4, %v336_v1  ;;  %v403_v9 = vld [vmem:[%s770_s0 + $0x42] ss:$8 sm:$0xf0]   ;;  %v413_v20 = vld [vmem:[%s770_s0 + $0x41] ss:$8 sm:$0xf]  }
  0x1c   :  { %180 = vrot.lane.b32.xlu1 %v179_v40, %s432_s15  ;;  %338 = vst.msk [vmem:[%s771_s1 + $0x8] sm:$0xff] %vm6_vm1, %v13_v5   ;;  %v400_v10 = vld [vmem:[%s770_s0 + $0x2] ss:$8 sm:$0xf]   ;;  %v265_v12 = vsel %vm4_vm0, %v403_v9, %v402_v8  ;;  %vm258_vm7 = vcmask 97344   ;;  %vm301_vm8 = vcmask 64544  }
  0x1d   :  { %v401_v11 = vld [vmem:[%s770_s0 + $0x2] ss:$8 sm:$0xf0]   ;;  %v414_v21 = vld [vmem:[%s770_s0 + $0x41] ss:$8 sm:$0xf0]  }
  0x1e   :  { %170 = vrot.lane.b32.xlu0 %v169_v41, %s432_s15  ;;  %v255_v13 = vsel %vm4_vm0, %v401_v11, %v400_v10  ;;  %v408_v14 = vld [vmem:[%s770_s0 + $0xc2] ss:$8 sm:$0xf]   ;;  %v411_v22 = vld [vmem:[%s770_s0 + $0x1] ss:$8 sm:$0xf]   ;;  %v308_v24 = vsel %vm4_vm0, %v414_v21, %v413_v20 }
  0x1f   :  { %v409_v15 = vld [vmem:[%s770_s0 + $0xc2] ss:$8 sm:$0xf0]   ;;  %v412_v23 = vld [vmem:[%s770_s0 + $0x1] ss:$8 sm:$0xf0]  }
  0x20   :  { %202 = vrot.lane.b32.xlu1 %v201_v46, %s432_s15  ;;  %v405_v16 = vld [vmem:[%s770_s0 + $0x82] ss:$8 sm:$0xf]   ;;  %v287_v18 = vsel %vm4_vm0, %v409_v15, %v408_v14  ;;  %v298_v25 = vsel %vm4_vm0, %v412_v23, %v411_v22  ;;  %v419_v26 = vld [vmem:[%s770_s0 + $0xc1] ss:$8 sm:$0xf]  }
  0x21   :  { %v406_v17 = vld [vmem:[%s770_s0 + $0x82] ss:$8 sm:$0xf0]   ;;  %v420_v27 = vld [vmem:[%s770_s0 + $0xc1] ss:$8 sm:$0xf0]  }
  0x22   :  { %191 = vrot.lane.b32.xlu0 %v190_v48, %s432_s15  ;;  %s434_s15 = smov 8   ;;  %v276_v19 = vsel %vm4_vm0, %v406_v17, %v405_v16  ;;  %v416_v28 = vld [vmem:[%s770_s0 + $0x81] ss:$8 sm:$0xf]   ;;  %v330_v30 = vsel %vm4_vm0, %v420_v27, %v419_v26 }
  0x23   :  { %v417_v29 = vld [vmem:[%s770_s0 + $0x81] ss:$8 sm:$0xf0]   ;;  %s435_s0 = smov 4  }
  0x24   :  { %223 = vrot.lane.b32.xlu1 %v222_v57, %s433_s23  ;;  %v319_v31 = vsel %vm4_vm0, %v417_v29, %v416_v28 }
  0x26   :  { %213 = vrot.lane.b32.xlu0 %v212_v62, %s433_s23 }
  0x28   :  { %245 = vrot.lane.b32.xlu1 %v244_v6, %s433_s23 }
  0x2a   :  { %234 = vrot.lane.b32.xlu0 %v233_v7, %s433_s23 }
  0x2c   :  { %266 = vrot.lane.b32.xlu1 %v265_v12, %s434_s15 }
  0x2e   :  { %256 = vrot.lane.b32.xlu0 %v255_v13, %s434_s15 }
  0x30   :  { %288 = vrot.lane.b32.xlu1 %v287_v18, %s434_s15 }
  0x32   :  { %277 = vrot.lane.b32.xlu0 %v276_v19, %s434_s15 }
  0x34   :  { %309 = vrot.lane.b32.xlu1 %v308_v24, %s435_s0 }
  0x36   :  { %299 = vrot.lane.b32.xlu0 %v298_v25, %s435_s0 }
  0x38   :  { %331 = vrot.lane.b32.xlu1 %v330_v30, %s435_s0 }
  0x3a   :  { %320 = vrot.lane.b32.xlu0 %v319_v31, %s435_s0 }
  0x76   :  { %v63_v32 = vpop.permute.xlu1 %62  }
  0x77   :  { %352 = vst.msk [vmem:[%s771_s1 + $0x10] sm:$0xff] %vm43_vm2, %v63_v32  }
  0x78   :  { %v42_v33 = vpop.permute.xlu0 %41  }
  0x79   :  { %44 = vst.msk [vmem:[%s771_s1] sm:$0xff] %vm43_vm2, %v42_v33  }
  0x7a   :  { %v74_v34 = vpop.permute.xlu1 %73  }
  0x7b   :  { %355 = vst.msk [vmem:[%s771_s1 + $0x18] sm:$0xff] %vm43_vm2, %v74_v34  }
  0x7c   :  { %v52_v35 = vpop.permute.xlu0 %51  }
  0x7d   :  { %349 = vst.msk [vmem:[%s771_s1 + $0x8] sm:$0xff] %vm43_vm2, %v52_v35  }
  0x7e   :  { %v95_v36 = vpop.permute.xlu1 %94  }
  0x7f   :  { %360 = vst.msk [vmem:[%s771_s1 + $0x8] sm:$0xff] %vm86_vm3, %v95_v36  }
  0x80   :  { %v85_v37 = vpop.permute.xlu0 %84  }
  0x81   :  { %87 = vst.msk [vmem:[%s771_s1] sm:$0xff] %vm86_vm3, %v85_v37  }
  0x82   :  { %v117_v38 = vpop.permute.xlu1 %116  }
  0x83   :  { %366 = vst.msk [vmem:[%s771_s1 + $0x18] sm:$0xff] %vm86_vm3, %v117_v38  }
  0x84   :  { %v106_v39 = vpop.permute.xlu0 %105  }
  0x85   :  { %363 = vst.msk [vmem:[%s771_s1 + $0x10] sm:$0xff] %vm86_vm3, %v106_v39  }
  0x86   :  { %v138_v40 = vpop.permute.xlu1 %137  }
  0x87   :  { %371 = vst.msk [vmem:[%s771_s1 + $0x8] sm:$0xff] %vm129_vm4, %v138_v40  }
  0x88   :  { %v128_v41 = vpop.permute.xlu0 %127  }
  0x89   :  { %130 = vst.msk [vmem:[%s771_s1] sm:$0xff] %vm129_vm4, %v128_v41  }
  0x8a   :  { %v160_v42 = vpop.permute.xlu1 %159  }
  0x8b   :  { %377 = vst.msk [vmem:[%s771_s1 + $0x18] sm:$0xff] %vm129_vm4, %v160_v42  }
  0x8c   :  { %v149_v43 = vpop.permute.xlu0 %148  }
  0x8d   :  { %374 = vst.msk [vmem:[%s771_s1 + $0x10] sm:$0xff] %vm129_vm4, %v149_v43  }
  0x8e   :  { %v181_v44 = vpop.permute.xlu1 %180  }
  0x8f   :  { %382 = vst.msk [vmem:[%s771_s1 + $0x8] sm:$0xff] %vm172_vm5, %v181_v44  }
  0x90   :  { %v171_v45 = vpop.permute.xlu0 %170  }
  0x91   :  { %173 = vst.msk [vmem:[%s771_s1] sm:$0xff] %vm172_vm5, %v171_v45  }
  0x92   :  { %v203_v46 = vpop.permute.xlu1 %202  }
  0x93   :  { %388 = vst.msk [vmem:[%s771_s1 + $0x18] sm:$0xff] %vm172_vm5, %v203_v46  }
  0x94   :  { %v192_v47 = vpop.permute.xlu0 %191  }
  0x95   :  { %385 = vst.msk [vmem:[%s771_s1 + $0x10] sm:$0xff] %vm172_vm5, %v192_v47  }
  0x96   :  { %v224_v48 = vpop.permute.xlu1 %223  }
  0x97   :  { %393 = vst.msk [vmem:[%s771_s1 + $0x8] sm:$0xff] %vm215_vm6, %v224_v48  }
  0x98   :  { %v214_v49 = vpop.permute.xlu0 %213  }
  0x99   :  { %216 = vst.msk [vmem:[%s771_s1] sm:$0xff] %vm215_vm6, %v214_v49  }
  0x9a   :  { %v246_v50 = vpop.permute.xlu1 %245  }
  0x9b   :  { %399 = vst.msk [vmem:[%s771_s1 + $0x18] sm:$0xff] %vm215_vm6, %v246_v50  }
  0x9c   :  { %v235_v51 = vpop.permute.xlu0 %234  }
  0x9d   :  { %396 = vst.msk [vmem:[%s771_s1 + $0x10] sm:$0xff] %vm215_vm6, %v235_v51  }
  0x9e   :  { %v267_v52 = vpop.permute.xlu1 %266  }
  0x9f   :  { %404 = vst.msk [vmem:[%s771_s1 + $0x8] sm:$0xff] %vm258_vm7, %v267_v52  }
  0xa0   :  { %v257_v53 = vpop.permute.xlu0 %256  }
  0xa1   :  { %259 = vst.msk [vmem:[%s771_s1] sm:$0xff] %vm258_vm7, %v257_v53  }
  0xa2   :  { %v289_v54 = vpop.permute.xlu1 %288  }
  0xa3   :  { %410 = vst.msk [vmem:[%s771_s1 + $0x18] sm:$0xff] %vm258_vm7, %v289_v54  }
  0xa4   :  { %v278_v55 = vpop.permute.xlu0 %277  }
  0xa5   :  { %407 = vst.msk [vmem:[%s771_s1 + $0x10] sm:$0xff] %vm258_vm7, %v278_v55  }
  0xa6   :  { %v310_v56 = vpop.permute.xlu1 %309  }
  0xa7   :  { %415 = vst.msk [vmem:[%s771_s1 + $0x8] sm:$0xff] %vm301_vm8, %v310_v56  }
  0xa8   :  { %v300_v57 = vpop.permute.xlu0 %299  }
  0xa9   :  { %302 = vst.msk [vmem:[%s771_s1] sm:$0xff] %vm301_vm8, %v300_v57  }
  0xaa   :  { %v332_v58 = vpop.permute.xlu1 %331  }
  0xab   :  { %421 = vst.msk [vmem:[%s771_s1 + $0x18] sm:$0xff] %vm301_vm8, %v332_v58  }
  0xac   :  { %v321_v59 = vpop.permute.xlu0 %320  }
  0xad   :  { %418 = vst.msk [vmem:[%s771_s1 + $0x10] sm:$0xff] %vm301_vm8, %v321_v59  }

// kernel: residual_block_forward.1
= control target key start
LH: loop header
LB: loop body
LE: loop exit
PB: predicated region body
PF: predicated region fallthrough
CT: control target
= control target key end

     0   :  { %s3243_s13 = smov 0   ;;  %s4586_s0 = inlined_call_operand.vmem [shape: f32[2,8,256], index: 0, kind: input, shape index: {}]   ;;  %s4587_s1 = inlined_call_operand.vmem [shape: f32[256,256], index: 1, kind: input, shape index: {}]   ;;  %s4588_s2 = inlined_call_operand.vmem [shape: f32[1,256], index: 2, kind: input, shape index: {}]   ;;  %s4589_s3 = inlined_call_operand.vmem [shape: f32[1,256], index: 3, kind: input, shape index: {}]   ;;  %s4590_s4 = inlined_call_operand.vmem [shape: bf16[3,256,256], index: 4, kind: input, shape index: {}]   ;;  %s4591_s5 = inlined_call_operand.vmem [shape: f32[1,256], index: 5, kind: input, shape index: {}]   ;;  %s4592_s6 = inlined_call_operand.vmem [shape: f32[1,256], index: 6, kind: input, shape index: {}]   ;;  %s4593_s7 = inlined_call_operand.vmem [shape: f32[1,256], index: 7, kind: input, shape index: {}]   ;;  %s4594_s8 = inlined_call_operand.vmem [shape: bf16[3,256,256], index: 8, kind: input, shape index: {}]   ;;  %s4595_s9 = inlined_call_operand.vmem [shape: f32[1,256], index: 9, kind: input, shape index: {}]   ;;  %s4596_s10 = inlined_call_operand.vmem [shape: f32[2,8,256], index: 10, kind: output, shape index: {}]  }
   0x1 LB: > { %s2478_s14 = sadd.s32 4294967295, %s3185_s13   ;;  %p2482_p0 = scmp.ge.s32.totalorder %s3185_s13, 1  ;;  %s3185_s13 = sphi %s3243_s13, %s20_s13  }
   0x2   : > { %p312_p1 = scmp.lt.s32.totalorder %s3185_s13, 3 }
   0x4   : > { %p313_p2 = pnand %p2482_p0, %p312_p1 }
   0x6   : > { %316 = sbr.rel (%p313_p2) target bundleno = 1536 (0x600), region = 60 }
   0xb   : > { %v400_v0 = vld [vmem:[%s4587_s1 + $0xf8] sm:$0xff]  ;;  %v399_v1 = vld [vmem:[%s4587_s1 + $0xf0] sm:$0xff]  ;;  %v398_v2 = vld [vmem:[%s4587_s1 + $0xe8] sm:$0xff]  ;;  %p350_p3 = scmp.lt.s32.totalorder %s2478_s14, 1 }
   0xc   : > { %449 = vmatprep.subr.mxu0 %v400_v0  ;;  %v397_v3 = vld [vmem:[%s4587_s1 + $0xe0] sm:$0xff]  ;;  %546 = vmatprep.subr.mxu1 %v400_v0  ;;  %v396_v4 = vld [vmem:[%s4587_s1 + $0xd8] sm:$0xff]  ;;  %v395_v5 = vld [vmem:[%s4587_s1 + $0xd0] sm:$0xff] }
   0xd   : > { %450 = vmatpush1.msra.mxu0 %v399_v1  ;;  %547 = vmatpush1.msra.mxu1 %v399_v1  ;;  %v394_v6 = vld [vmem:[%s4587_s1 + $0xc8] sm:$0xff]  ;;  %v393_v7 = vld [vmem:[%s4587_s1 + $0xc0] sm:$0xff]  ;;  %v392_v8 = vld [vmem:[%s4587_s1 + $0xb8] sm:$0xff]  ;;  %s4618_s14 = smov (!%p350_p3, %s2478_s14), 1 }
   0xe   : > { %451 = vmatprep.subr.mxu0 %v398_v2  ;;  %548 = vmatprep.subr.mxu1 %v398_v2  ;;  %v391_v9 = vld [vmem:[%s4587_s1 + $0xb0] sm:$0xff]  ;;  %v390_v10 = vld [vmem:[%s4587_s1 + $0xa8] sm:$0xff]  ;;  %v389_v11 = vld [vmem:[%s4587_s1 + $0xa0] sm:$0xff]  ;;  %s2809_s15 = sshll.u32 %s4618_s14, 4 }
   0xf   : > { %452 = vmatpush1.msra.mxu0 %v397_v3  ;;  %549 = vmatpush1.msra.mxu1 %v397_v3  ;;  %v388_v12 = vld [vmem:[%s4587_s1 + $0x98] sm:$0xff]  ;;  %v387_v13 = vld [vmem:[%s4587_s1 + $0x90] sm:$0xff]  ;;  %v386_v14 = vld [vmem:[%s4587_s1 + $0x88] sm:$0xff]  ;;  %s3326_s24 = scalar_lea.vmem %s4586_s0, %s2809_s15  ;;  %s359_s27 = scalar_lea.vmem %s4596_s10, %s2809_s15 }
  0x10   : > { %453 = vmatprep.subr.mxu0 %v396_v4  ;;  %550 = vmatprep.subr.mxu1 %v396_v4  ;;  %v385_v15 = vld [vmem:[%s4587_s1 + $0x80] sm:$0xff]  ;;  %v384_v16 = vld [vmem:[%s4587_s1 + $0x78] sm:$0xff]  ;;  %v383_v17 = vld [vmem:[%s4587_s1 + $0x70] sm:$0xff] }
  0x11   : > { %454 = vmatpush1.msra.mxu0 %v395_v5  ;;  %551 = vmatpush1.msra.mxu1 %v395_v5  ;;  %v382_v18 = vld [vmem:[%s4587_s1 + $0x68] sm:$0xff]  ;;  %v381_v19 = vld [vmem:[%s4587_s1 + $0x60] sm:$0xff]  ;;  %v380_v20 = vld [vmem:[%s4587_s1 + $0x58] sm:$0xff] }
  0x12   : > { %455 = vmatprep.subr.mxu0 %v394_v6  ;;  %552 = vmatprep.subr.mxu1 %v394_v6  ;;  %v379_v21 = vld [vmem:[%s4587_s1 + $0x50] sm:$0xff]  ;;  %v378_v22 = vld [vmem:[%s4587_s1 + $0x48] sm:$0xff]  ;;  %v377_v23 = vld [vmem:[%s4587_s1 + $0x40] sm:$0xff] }
  0x13   : > { %456 = vmatpush1.msra.mxu0 %v393_v7  ;;  %553 = vmatpush1.msra.mxu1 %v393_v7  ;;  %v376_v24 = vld [vmem:[%s4587_s1 + $0x38] sm:$0xff]  ;;  %v375_v25 = vld [vmem:[%s4587_s1 + $0x30] sm:$0xff]  ;;  %v3344_v26 = vld [vmem:[%s3326_s24 + $0x8] sm:$0xff] }
  0x14   : > { %457 = vmatprep.subr.mxu0 %v392_v8  ;;  %554 = vmatprep.subr.mxu1 %v392_v8  ;;  %v374_v27 = vld [vmem:[%s4587_s1 + $0x28] sm:$0xff]  ;;  %v443_v28 = vrot.slane %v3344_v26, 4  ;;  %v373_v29 = vld [vmem:[%s4587_s1 + $0x20] sm:$0xff]  ;;  %v372_v30 = vld [vmem:[%s4587_s1 + $0x18] sm:$0xff] }
  0x15   : > { %458 = vmatpush1.msra.mxu0 %v391_v9  ;;  %555 = vmatpush1.msra.mxu1 %v391_v9  ;;  %v371_v32 = vld [vmem:[%s4587_s1 + $0x10] sm:$0xff]  ;;  %v370_v33 = vld [vmem:[%s4587_s1 + $0x8] sm:$0xff]  ;;  %v369_v35 = vld [vmem:[%s4587_s1] sm:$0xff] }
  0x16   : > { %459 = vmatprep.subr.mxu0 %v390_v10  ;;  %556 = vmatprep.subr.mxu1 %v390_v10  ;;  %v444_v31 = vadd.f32 %v443_v28, %v3344_v26  ;;  %v432_v36 = vld [vmem:[%s4587_s1 + $0x1f8] sm:$0xff]  ;;  %v431_v38 = vld [vmem:[%s4587_s1 + $0x1f0] sm:$0xff]  ;;  %v430_v39 = vld [vmem:[%s4587_s1 + $0x1e8] sm:$0xff] }
  0x17   : > { %460 = vmatpush1.msra.mxu0 %v389_v11  ;;  %557 = vmatpush1.msra.mxu1 %v389_v11  ;;  %v429_v41 = vld [vmem:[%s4587_s1 + $0x1e0] sm:$0xff]  ;;  %v428_v42 = vld [vmem:[%s4587_s1 + $0x1d8] sm:$0xff]  ;;  %v427_v44 = vld [vmem:[%s4587_s1 + $0x1d0] sm:$0xff] }
  0x18   : > { %461 = vmatprep.subr.mxu0 %v388_v12  ;;  %558 = vmatprep.subr.mxu1 %v388_v12  ;;  %v445_v34 = vrot.slane %v444_v31, 2  ;;  %v426_v45 = vld [vmem:[%s4587_s1 + $0x1c8] sm:$0xff]  ;;  %v425_v46 = vld [vmem:[%s4587_s1 + $0x1c0] sm:$0xff]  ;;  %v424_v47 = vld [vmem:[%s4587_s1 + $0x1b8] sm:$0xff] }
  0x19   : > { %462 = vmatpush1.msra.mxu0 %v387_v13  ;;  %559 = vmatpush1.msra.mxu1 %v387_v13  ;;  %v3394_v48 = vld [vmem:[%s3326_s24] sm:$0xff]  ;;  %v423_v49 = vld [vmem:[%s4587_s1 + $0x1b0] sm:$0xff]  ;;  %v422_v50 = vld [vmem:[%s4587_s1 + $0x1a8] sm:$0xff] }
  0x1a   : > { %463 = vmatprep.subr.mxu0 %v386_v14  ;;  %560 = vmatprep.subr.mxu1 %v386_v14  ;;  %v446_v37 = vadd.f32 %v445_v34, %v444_v31  ;;  %v421_v51 = vld [vmem:[%s4587_s1 + $0x1a0] sm:$0xff]  ;;  %v420_v52 = vld [vmem:[%s4587_s1 + $0x198] sm:$0xff]  ;;  %v419_v53 = vld [vmem:[%s4587_s1 + $0x190] sm:$0xff]  ;;  %v437_v54 = vrot.slane %v3394_v48, 4 }
  0x1b   : > { %464 = vmatpush1.msra.mxu0 %v385_v15  ;;  %561 = vmatpush1.msra.mxu1 %v385_v15  ;;  %v418_v55 = vld [vmem:[%s4587_s1 + $0x188] sm:$0xff]  ;;  %v3418_v56 = vld [vmem:[%s4587_s1 + $0x180] sm:$0xff]  ;;  %v3423_v57 = vld [vmem:[%s4587_s1 + $0x178] sm:$0xff] }
  0x1c   : > { %465 = vmatprep.subr.mxu0 %v384_v16  ;;  %562 = vmatprep.subr.mxu1 %v384_v16  ;;  %v447_v40 = vrot.slane %v446_v37, 1  ;;  %v3428_v58 = vld [vmem:[%s4587_s1 + $0x170] sm:$0xff]  ;;  %v438_v59 = vadd.f32 %v437_v54, %v3394_v48  ;;  %v3434_v60 = vld [vmem:[%s4587_s1 + $0x168] sm:$0xff]  ;;  %v3439_v61 = vld [vmem:[%s4587_s1 + $0x160] sm:$0xff] }
  0x1d   : > { %466 = vmatpush1.msra.mxu0 %v383_v17  ;;  %563 = vmatpush1.msra.mxu1 %v383_v17  ;;  %v3445_v62 = vld [vmem:[%s4587_s1 + $0x158] sm:$0xff]  ;;  %v3451_v63 = vld [vmem:[%s4587_s1 + $0x150] sm:$0xff]  ;;  %v3458_v1 = vld [vmem:[%s4587_s1 + $0x148] sm:$0xff] }
  0x1e   : > { %467 = vmatprep.subr.mxu0 %v382_v18  ;;  %564 = vmatprep.subr.mxu1 %v382_v18  ;;  %v448_v43 = vadd.f32 %v447_v40, %v446_v37  ;;  %v439_v0 = vrot.slane %v438_v59, 2  ;;  %v3465_v2 = vld [vmem:[%s4587_s1 + $0x140] sm:$0xff]  ;;  %v3472_v3 = vld [vmem:[%s4587_s1 + $0x138] sm:$0xff]  ;;  %v3479_v4 = vld [vmem:[%s4587_s1 + $0x130] sm:$0xff] }
  0x1f   : > { %468 = vmatpush1.msra.mxu0 %v381_v19  ;;  %565 = vmatpush1.msra.mxu1 %v381_v19  ;;  %v3486_v6 = vld [vmem:[%s4587_s1 + $0x128] sm:$0xff]  ;;  %v3493_v7 = vld [vmem:[%s4587_s1 + $0x120] sm:$0xff]  ;;  %v3500_v8 = vld [vmem:[%s4587_s1 + $0x118] sm:$0xff] }
  0x20   : > { %469 = vmatprep.subr.mxu0 %v380_v20  ;;  %566 = vmatprep.subr.mxu1 %v380_v20  ;;  %v440_v5 = vadd.f32 %v439_v0, %v438_v59  ;;  %v3507_v9 = vld [vmem:[%s4587_s1 + $0x110] sm:$0xff]  ;;  %v3514_v11 = vld [vmem:[%s4587_s1 + $0x108] sm:$0xff]  ;;  %v3521_v12 = vld [vmem:[%s4587_s1 + $0x100] sm:$0xff] }
  0x21   : > { %470 = vmatpush1.msra.mxu0 %v379_v21  ;;  %567 = vmatpush1.msra.mxu1 %v379_v21  ;;  %v2822_v14 = vld [vmem:[%s4590_s4 + $0x74] ss:$8 sps:$4 sm:$0xff]   ;;  %v2826_v15 = vld [vmem:[%s4590_s4 + $0x170] ss:$8 sps:$4 sm:$0xff]   ;;  %v2832_v17 = vld [vmem:[%s4590_s4 + $0x160] ss:$8 sps:$4 sm:$0xff]  }
  0x22   : > { %471 = vmatprep.subr.mxu0 %v378_v22  ;;  %568 = vmatprep.subr.mxu1 %v378_v22  ;;  %v441_v10 = vrot.slane %v440_v5, 1  ;;  %v2828_v16 = vld [vmem:[%s4590_s4 + $0x174] ss:$8 sps:$4 sm:$0xff]   ;;  %v2834_v18 = vld [vmem:[%s4590_s4 + $0x164] ss:$8 sps:$4 sm:$0xff]  }
  0x23   : > { %472 = vmatpush1.msra.mxu0 %v377_v23  ;;  %569 = vmatpush1.msra.mxu1 %v377_v23  ;;  %v2838_v19 = vld [vmem:[%s4590_s4 + $0x150] ss:$8 sps:$4 sm:$0xff]   ;;  %v2840_v20 = vld [vmem:[%s4590_s4 + $0x154] ss:$8 sps:$4 sm:$0xff]   ;;  %v2844_v21 = vld [vmem:[%s4590_s4 + $0x140] ss:$8 sps:$4 sm:$0xff]   ;;  %v360_v23 = vlaneseq }
  0x24   : > { %473 = vmatprep.subr.mxu0 %v376_v24  ;;  %570 = vmatprep.subr.mxu1 %v376_v24  ;;  %v442_v13 = vadd.f32 %v441_v10, %v440_v5  ;;  %v2846_v22 = vld [vmem:[%s4590_s4 + $0x144] ss:$8 sps:$4 sm:$0xff]   ;;  %v2835_v54 = vld [vmem:[%s4590_s4 + $0x40] ss:$8 sps:$4 sm:$0xff]   ;;  %v2841_v59 = vld [vmem:[%s4590_s4 + $0x30] ss:$8 sps:$4 sm:$0xff]  }
  0x25   : > { %474 = vmatpush1.msra.mxu0 %v375_v25  ;;  %571 = vmatpush1.msra.mxu1 %v375_v25  ;;  %v3563_v24 = vshrl.u32 %v360_v23, 7  ;;  %v2849_v0 = vld [vmem:[%s4590_s4 + $0x24] ss:$8 sps:$4 sm:$0xff]   ;;  %v2847_v5 = vld [vmem:[%s4590_s4 + $0x20] ss:$8 sps:$4 sm:$0xff]   ;;  %vm362_vm0 = vcmp.lt.s32.totalorder %v360_v23, 256 }
  0x26   : > { %475 = vmatprep.subr.mxu0 %v374_v27  ;;  %572 = vmatprep.subr.mxu1 %v374_v27  ;;  %v2852_v10 = vld [vmem:[%s4590_s4 + $0x134] ss:$8 sps:$4 sm:$0xff]   ;;  %v2901_v23 = vld [vmem:[%s4590_s4 + $0x90] ss:$8 sps:$4 sm:$0xff]  }
  0x27   : > { %476 = vmatpush1.msra.mxu0 %v373_v29  ;;  %573 = vmatpush1.msra.mxu1 %v373_v29  ;;  %v3566_v25 = vsub.s32 0, %v3563_v24 }
  0x28   : > { %477 = vmatprep.subr.mxu0 %v372_v30  ;;  %574 = vmatprep.subr.mxu1 %v372_v30 }
  0x29   : > { %478 = vmatpush1.msra.mxu0 %v371_v32  ;;  %575 = vmatpush1.msra.mxu1 %v371_v32  ;;  %4605 = vst [vmem:[#allocation3_spill] sm:$0xff] %v3566_v25 }
  0x2a   : > { %479 = vmatprep.subr.mxu0 %v370_v33  ;;  %576 = vmatprep.subr.mxu1 %v370_v33 }
  0x2b   : > { %480 = vmatpush1.msra.mxu0 %v369_v35  ;;  %577 = vmatpush1.msra.mxu1 %v369_v35 }
  0x2c   : > { %481 = vmatprep.subr.mxu0 %v432_v36  ;;  %578 = vmatprep.subr.mxu1 %v432_v36 }
  0x2d   : > { %482 = vmatpush2.msra.mxu0 %v431_v38  ;;  %513 = vmatprep.mubr.f32.mxu0 %v448_v43 }
  0x2e   : > { %483 = vmatprep.subr.mxu0 %v430_v39  ;;  %579 = vmatpush2.msra.mxu1 %v431_v38 }
  0x2f   : > { %484 = vmatpush2.msra.mxu0 %v429_v41  ;;  %580 = vmatprep.subr.mxu1 %v430_v39 }
  0x30   : > { %485 = vmatprep.subr.mxu0 %v428_v42  ;;  %581 = vmatpush2.msra.mxu1 %v429_v41 }
  0x31   : > { %486 = vmatpush2.msra.mxu0 %v427_v44  ;;  %582 = vmatprep.subr.mxu1 %v428_v42 }
  0x32   : > { %487 = vmatprep.subr.mxu0 %v426_v45  ;;  %583 = vmatpush2.msra.mxu1 %v427_v44 }
  0x33   : > { %488 = vmatpush2.msra.mxu0 %v425_v46  ;;  %584 = vmatprep.subr.mxu1 %v426_v45 }
  0x34   : > { %489 = vmatprep.subr.mxu0 %v424_v47  ;;  %585 = vmatpush2.msra.mxu1 %v425_v46 }
  0x35   : > { %490 = vmatpush2.msra.mxu0 %v423_v49  ;;  %586 = vmatprep.subr.mxu1 %v424_v47 }
  0x36   : > { %491 = vmatprep.subr.mxu0 %v422_v50  ;;  %587 = vmatpush2.msra.mxu1 %v423_v49  ;;  %v2825_v49 = vld [vmem:[%s4590_s4 + $0x64] ss:$8 sps:$4 sm:$0xff]  }
  0x37   : > { %492 = vmatpush2.msra.mxu0 %v421_v51  ;;  %588 = vmatprep.subr.mxu1 %v422_v50  ;;  %v2823_v50 = vld [vmem:[%s4590_s4 + $0x60] ss:$8 sps:$4 sm:$0xff]  }
  0x38   : > { %493 = vmatprep.subr.mxu0 %v420_v52  ;;  %589 = vmatpush2.msra.mxu1 %v421_v51  ;;  %v2831_v51 = vld [vmem:[%s4590_s4 + $0x54] ss:$8 sps:$4 sm:$0xff]  }
  0x39   : > { %494 = vmatpush2.msra.mxu0 %v419_v53  ;;  %590 = vmatprep.subr.mxu1 %v420_v52  ;;  %v2829_v52 = vld [vmem:[%s4590_s4 + $0x50] ss:$8 sps:$4 sm:$0xff]  }
  0x3a   : > { %495 = vmatprep.subr.mxu0 %v418_v55  ;;  %591 = vmatpush2.msra.mxu1 %v419_v53  ;;  %v2837_v53 = vld [vmem:[%s4590_s4 + $0x44] ss:$8 sps:$4 sm:$0xff]  }
  0x3b   : > { %496 = vmatpush2.msra.mxu0 %v3418_v56  ;;  %592 = vmatprep.subr.mxu1 %v418_v55  ;;  %v2843_v55 = vld [vmem:[%s4590_s4 + $0x34] ss:$8 sps:$4 sm:$0xff]  }
  0x3c   : > { %497 = vmatprep.subr.mxu0 %v3423_v57  ;;  %593 = vmatpush2.msra.mxu1 %v3418_v56 }
  0x3d   : > { %498 = vmatpush2.msra.mxu0 %v3428_v58  ;;  %594 = vmatprep.subr.mxu1 %v3423_v57 }
  0x3e   : > { %499 = vmatprep.subr.mxu0 %v3434_v60  ;;  %595 = vmatpush2.msra.mxu1 %v3428_v58 }
  0x3f   : > { %500 = vmatpush2.msra.mxu0 %v3439_v61  ;;  %596 = vmatprep.subr.mxu1 %v3434_v60 }
  0x40   : > { %501 = vmatprep.subr.mxu0 %v3445_v62  ;;  %597 = vmatpush2.msra.mxu1 %v3439_v61 }
  0x41   : > { %502 = vmatpush2.msra.mxu0 %v3451_v63  ;;  %598 = vmatprep.subr.mxu1 %v3445_v62 }
  0x42   : > { %503 = vmatprep.subr.mxu0 %v3458_v1  ;;  %599 = vmatpush2.msra.mxu1 %v3451_v63 }
  0x43   : > { %504 = vmatpush2.msra.mxu0 %v3465_v2  ;;  %600 = vmatprep.subr.mxu1 %v3458_v1 }
  0x44   : > { %505 = vmatprep.subr.mxu0 %v3472_v3  ;;  %601 = vmatpush2.msra.mxu1 %v3465_v2 }
  0x45   : > { %506 = vmatpush2.msra.mxu0 %v3479_v4  ;;  %602 = vmatprep.subr.mxu1 %v3472_v3 }
  0x46   : > { %507 = vmatprep.subr.mxu0 %v3486_v6  ;;  %603 = vmatpush2.msra.mxu1 %v3479_v4 }
  0x47   : > { %508 = vmatpush2.msra.mxu0 %v3493_v7  ;;  %604 = vmatprep.subr.mxu1 %v3486_v6 }
  0x48   : > { %509 = vmatprep.subr.mxu0 %v3500_v8  ;;  %605 = vmatpush2.msra.mxu1 %v3493_v7 }
  0x49   : > { %510 = vmatpush2.msra.mxu0 %v3507_v9  ;;  %606 = vmatprep.subr.mxu1 %v3500_v8 }
  0x4a   : > { %511 = vmatprep.subr.mxu0 %v3514_v11  ;;  %607 = vmatpush2.msra.mxu1 %v3507_v9 }
  0x4b   : > { %512 = vmatpush2.msra.mxu0 %v3521_v12  ;;  %608 = vmatprep.subr.mxu1 %v3514_v11 }
  0x4c   : > { %514 = vmatmul.mubr.f32.vlgmr.msra.gmra.mxu0 %v442_v13  ;;  %609 = vmatpush2.msra.mxu1 %v3521_v12  ;;  %v2850_v13 = vld [vmem:[%s4590_s4 + $0x130] ss:$8 sps:$4 sm:$0xff]  }
  0x4d   : > { %1124 = vmatprep.subr.bf16.mxu1 %v2822_v14  ;;  %923 = vmatprep.subr.bf16.mxu0 %v2828_v16  ;;  %v2855_v14 = vld [vmem:[%s4590_s4 + $0x14] ss:$8 sps:$4 sm:$0xff]   ;;  %v2858_v16 = vld [vmem:[%s4590_s4 + $0x124] ss:$8 sps:$4 sm:$0xff]  }
  0x4e   : > { %924 = vmatpush1.bf16.msra.mxu0 %v2826_v15  ;;  %v2853_v15 = vld [vmem:[%s4590_s4 + $0x10] ss:$8 sps:$4 sm:$0xff]  }
  0x4f   : > { %925 = vmatprep.subr.bf16.mxu0 %v2834_v18  ;;  %v2861_v18 = vld [vmem:[%s4590_s4 + $0x4] ss:$8 sps:$4 sm:$0xff]  }
  0x52   : > { %926 = vmatpush1.bf16.msra.mxu0 %v2832_v17  ;;  %v2856_v17 = vld [vmem:[%s4590_s4 + $0x120] ss:$8 sps:$4 sm:$0xff]  }
  0x53   : > { %927 = vmatprep.subr.bf16.mxu0 %v2840_v20  ;;  %v2864_v20 = vld [vmem:[%s4590_s4 + $0x114] ss:$8 sps:$4 sm:$0xff]  }
  0x56   : > { %928 = vmatpush1.bf16.msra.mxu0 %v2838_v19  ;;  %v2859_v19 = vld [vmem:[%s4590_s4] ss:$8 sps:$4 sm:$0xff]  }
  0x57   : > { %929 = vmatprep.subr.bf16.mxu0 %v2846_v22  ;;  %v2867_v22 = vld [vmem:[%s4590_s4 + $0xf4] ss:$8 sps:$4 sm:$0xff]  }
  0x5a   : > { %930 = vmatpush1.bf16.msra.mxu0 %v2844_v21  ;;  %v2862_v21 = vld [vmem:[%s4590_s4 + $0x110] ss:$8 sps:$4 sm:$0xff]  }
  0x5b   : > { %931 = vmatprep.subr.bf16.mxu0 %v2852_v10  ;;  %v3743_v10 = vld [vmem:[%s4587_s1 + $0xf8] sm:$0xff] }
  0x5e   : > { %932 = vmatpush1.bf16.msra.mxu0 %v2850_v13  ;;  %v2915_v13 = vld [vmem:[%s4590_s4 + $0x184] ss:$8 sps:$4 sm:$0xff]  }
  0x5f   : > { %933 = vmatprep.subr.bf16.mxu0 %v2858_v16 }
  0x62   : > { %934 = vmatpush1.bf16.msra.mxu0 %v2856_v17 }
  0x63   : > { %935 = vmatprep.subr.bf16.mxu0 %v2864_v20 }
  0x66   : > { %936 = vmatpush1.bf16.msra.mxu0 %v2862_v21 }
 0x10c   : > { %v515_v27 = vpop.f32.mrf.mxu0 }
 0x10d   : > { %v520_v28 = vmul.f32 0.001953125, %v515_v27  ;;  %v2865_v27 = vld [vmem:[%s4590_s4 + $0xf0] ss:$8 sps:$4 sm:$0xff]  }
 0x10e   : > { %v517_v29 = vpop.f32.mrf.mxu0 }
 0x10f   : > { %v525_v30 = vrot.slane %v520_v28, %v3566_v25  ;;  %v521_v31 = vmul.f32 0.001953125, %v517_v29  ;;  %v2870_v28 = vld [vmem:[%s4590_s4 + $0x104] ss:$8 sps:$4 sm:$0xff]   ;;  %v2868_v29 = vld [vmem:[%s4590_s4 + $0x100] ss:$8 sps:$4 sm:$0xff]  }
 0x110   : > { %937 = vmatprep.subr.bf16.mxu0 %v2870_v28 }
 0x111   : > { %v3570_v32 = vsub.f32 %v3394_v48, %v525_v30  ;;  %v529_v33 = vrot.slane %v521_v31, %v3566_v25  ;;  %v2820_v48 = vld [vmem:[%s4590_s4 + $0x70] ss:$8 sps:$4 sm:$0xff]   ;;  %938 = vmatpush1.bf16.msra.mxu0 %v2868_v29  ;;  %v2873_v30 = vld [vmem:[%s4590_s4 + $0xe4] ss:$8 sps:$4 sm:$0xff]   ;;  %v2871_v31 = vld [vmem:[%s4590_s4 + $0xe0] ss:$8 sps:$4 sm:$0xff]  }
 0x112   : > { %v436_v29 = vld [vmem:[%s4589_s3] sm:$0x3] }
 0x113   : > { %v532_v34 = vmul.f32 %v3570_v32, %v3570_v32  ;;  %v3576_v35 = vsub.f32 %v3344_v26, %v529_v33  ;;  %v2876_v33 = vld [vmem:[%s4590_s4 + $0x1f4] ss:$8 sps:$4 sm:$0xff]  }
 0x114   : > { %939 = vmatprep.subr.bf16.mxu0 %v2876_v33 }
 0x115   : > { %v534_v36 = vrot.slane %v532_v34, 4  ;;  %v533_v37 = vmul.f32 %v3576_v35, %v3576_v35 }
 0x117   : > { %v540_v38 = vrot.slane %v533_v37, 4  ;;  %v535_v39 = vadd.f32 %v534_v36, %v532_v34  ;;  %v2874_v34 = vld [vmem:[%s4590_s4 + $0x1f0] ss:$8 sps:$4 sm:$0xff]   ;;  %v2879_v36 = vld [vmem:[%s4590_s4 + $0xd4] ss:$8 sps:$4 sm:$0xff]  }
 0x118   : > { %940 = vmatpush2.bf16.msra.mxu0 %v2874_v34 }
 0x119   : > { %v541_v40 = vadd.f32 %v540_v38, %v533_v37  ;;  %v536_v41 = vrot.slane %v535_v39, 2  ;;  %v2877_v37 = vld [vmem:[%s4590_s4 + $0xd0] ss:$8 sps:$4 sm:$0xff]   ;;  %v2882_v38 = vld [vmem:[%s4590_s4 + $0x1e4] ss:$8 sps:$4 sm:$0xff]  }
 0x11a   : > { %941 = vmatprep.subr.bf16.mxu0 %v2882_v38 }
 0x11b   : > { %v542_v42 = vrot.slane %v541_v40, 2  ;;  %v537_v43 = vadd.f32 %v536_v41, %v535_v39  ;;  %v2880_v39 = vld [vmem:[%s4590_s4 + $0x1e0] ss:$8 sps:$4 sm:$0xff]  }
 0x11c   : > { %942 = vmatpush2.bf16.msra.mxu0 %v2880_v39  ;;  %v2883_v41 = vld [vmem:[%s4590_s4 + $0xc0] ss:$8 sps:$4 sm:$0xff]  }
 0x11d   : > { %v543_v44 = vadd.f32 %v542_v42, %v541_v40  ;;  %v538_v45 = vrot.slane %v537_v43, 1  ;;  %v2885_v40 = vld [vmem:[%s4590_s4 + $0xc4] ss:$8 sps:$4 sm:$0xff]   ;;  %v2888_v42 = vld [vmem:[%s4590_s4 + $0x1d4] ss:$8 sps:$4 sm:$0xff]  }
 0x11e   : > { %943 = vmatprep.subr.bf16.mxu0 %v2888_v42 }
 0x11f   : > { %v544_v46 = vrot.slane %v543_v44, 1  ;;  %v539_v26 = vadd.f32 %v538_v45, %v537_v43  ;;  %v2886_v43 = vld [vmem:[%s4590_s4 + $0x1d0] ss:$8 sps:$4 sm:$0xff]  }
 0x120   : > { %944 = vmatpush2.bf16.msra.mxu0 %v2886_v43  ;;  %v2889_v45 = vld [vmem:[%s4590_s4 + $0xb0] ss:$8 sps:$4 sm:$0xff]  }
 0x121   : > { %v545_v47 = vadd.f32 %v544_v46, %v543_v44  ;;  %v2891_v44 = vld [vmem:[%s4590_s4 + $0xb4] ss:$8 sps:$4 sm:$0xff]   ;;  %v2894_v46 = vld [vmem:[%s4590_s4 + $0x1c4] ss:$8 sps:$4 sm:$0xff]  }
 0x122   : > { %945 = vmatprep.subr.bf16.mxu0 %v2894_v46 }
 0x123   : > { %610 = vmatprep.mubr.f32.mxu1 %v545_v47  ;;  %v2892_v47 = vld [vmem:[%s4590_s4 + $0x1c0] ss:$8 sps:$4 sm:$0xff]  }
 0x124   : > { %611 = vmatmul.mubr.f32.vlgmr.msra.gmra.mxu1 %v539_v26  ;;  %946 = vmatpush2.bf16.msra.mxu0 %v2892_v47  ;;  %v2895_v26 = vld [vmem:[%s4590_s4 + $0xa0] ss:$8 sps:$4 sm:$0xff]  }
 0x125   : > { %1125 = vmatpush1.bf16.msra.mxu1 %v2820_v48  ;;  %v2897_v48 = vld [vmem:[%s4590_s4 + $0xa4] ss:$8 sps:$4 sm:$0xff]  }
 0x126   : > { %1126 = vmatprep.subr.bf16.mxu1 %v2825_v49  ;;  %v2900_v49 = vld [vmem:[%s4590_s4 + $0x1b4] ss:$8 sps:$4 sm:$0xff]  }
 0x127   : > { %947 = vmatprep.subr.bf16.mxu0 %v2900_v49 }
 0x129   : > { %1127 = vmatpush1.bf16.msra.mxu1 %v2823_v50  ;;  %v3187_v50 = vmov 0.0  }
 0x12a   : > { %1128 = vmatprep.subr.bf16.mxu1 %v2831_v51  ;;  %364 = vst.msk [vmem:[#allocation2] ss:$8 sm:$0x3] %vm362_vm0, %v3187_v50  ;;  %367 = vst.msk [vmem:[#allocation2 + $0x11] ss:$8 sm:$0x3] %vm362_vm0, %v3187_v50 }
 0x12b   : > { %v2898_v51 = vld [vmem:[%s4590_s4 + $0x1b0] ss:$8 sps:$4 sm:$0xff]  }
 0x12c   : > { %948 = vmatpush2.bf16.msra.mxu0 %v2898_v51 }
 0x12d   : > { %1129 = vmatpush1.bf16.msra.mxu1 %v2829_v52  ;;  %v2903_v52 = vld [vmem:[%s4590_s4 + $0x94] ss:$8 sps:$4 sm:$0xff]  }
 0x12e   : > { %1130 = vmatprep.subr.bf16.mxu1 %v2837_v53  ;;  %v2904_v53 = vld [vmem:[%s4590_s4 + $0x1a0] ss:$8 sps:$4 sm:$0xff]  }
 0x131   : > { %1131 = vmatpush1.bf16.msra.mxu1 %v2835_v54  ;;  %v2906_v54 = vld [vmem:[%s4590_s4 + $0x1a4] ss:$8 sps:$4 sm:$0xff]  }
 0x132   : > { %1132 = vmatprep.subr.bf16.mxu1 %v2843_v55  ;;  %v2909_v55 = vld [vmem:[%s4590_s4 + $0x84] ss:$8 sps:$4 sm:$0xff]   ;;  %949 = vmatprep.subr.bf16.mxu0 %v2906_v54 }
 0x133   : > { %950 = vmatpush2.bf16.msra.mxu0 %v2904_v53 }
 0x135   : > { %1133 = vmatpush1.bf16.msra.mxu1 %v2841_v59  ;;  %v2912_v59 = vld [vmem:[%s4590_s4 + $0x194] ss:$8 sps:$4 sm:$0xff]  }
 0x136   : > { %1134 = vmatprep.subr.bf16.mxu1 %v2849_v0  ;;  %v2907_v0 = vld [vmem:[%s4590_s4 + $0x80] ss:$8 sps:$4 sm:$0xff]   ;;  %951 = vmatprep.subr.bf16.mxu0 %v2912_v59 }
 0x139   : > { %1135 = vmatpush1.bf16.msra.mxu1 %v2847_v5  ;;  %v2910_v5 = vld [vmem:[%s4590_s4 + $0x190] ss:$8 sps:$4 sm:$0xff]  }
 0x13a   : > { %1136 = vmatprep.subr.bf16.mxu1 %v2855_v14  ;;  %952 = vmatpush2.bf16.msra.mxu0 %v2910_v5  ;;  %v2913_v14 = vld [vmem:[%s4590_s4 + $0x180] ss:$8 sps:$4 sm:$0xff]  }
 0x13b   : > { %953 = vmatprep.subr.bf16.mxu0 %v2915_v13 }
 0x13d   : > { %1137 = vmatpush1.bf16.msra.mxu1 %v2853_v15  ;;  %v2918_v15 = vld [vmem:[%s4590_s4 + $0x274] ss:$8 sps:$4 sm:$0xff]  }
 0x13e   : > { %1138 = vmatprep.subr.bf16.mxu1 %v2861_v18  ;;  %954 = vmatpush2.bf16.msra.mxu0 %v2913_v14 }
 0x13f   : > { %1370 = vmatprep.subr.bf16.mxu0 %v2918_v15 }
 0x141   : > { %1139 = vmatpush1.bf16.msra.mxu1 %v2859_v19 }
 0x142   : > { %1140 = vmatprep.subr.bf16.mxu1 %v2867_v22  ;;  %v435_v22 = vld [vmem:[%s4588_s2] sm:$0x3] }
 0x145   : > { %1141 = vmatpush2.bf16.msra.mxu1 %v2865_v27  ;;  %v3759_v27 = vsub.s32 1, %v3563_v24 }
 0x146   : > { %1142 = vmatprep.subr.bf16.mxu1 %v2873_v30 }
 0x147   : > { %4606 = vst [vmem:[#allocation4_spill] sm:$0xff] %v3759_v27  ;;  %v641_v38 = vrot.slane %v435_v22, %v3759_v27 }
 0x149   : > { %1143 = vmatpush2.bf16.msra.mxu1 %v2871_v31  ;;  %v637_v31 = vrot.slane %v435_v22, %v3566_v25 }
 0x14a   : > { %1144 = vmatprep.subr.bf16.mxu1 %v2879_v36  ;;  %v650_v36 = vrot.slane %v436_v29, %v3566_v25 }
 0x14d   : > { %1145 = vmatpush2.bf16.msra.mxu1 %v2877_v37 }
 0x14e   : > { %1146 = vmatprep.subr.bf16.mxu1 %v2885_v40  ;;  %v654_v40 = vrot.slane %v436_v29, %v3759_v27  ;;  %v3799_v29 = vld [vmem:[%s4587_s1 + $0xd8] sm:$0xff]  ;;  %v4084_v27 = vld [vmem:[%s4587_s1 + $0x1a8] sm:$0xff] }
 0x14f   : > { %4608 = vst [vmem:[#allocation6_spill] sm:$0xff] %v4084_v27 }
 0x151   : > { %1147 = vmatpush2.bf16.msra.mxu1 %v2883_v41 }
 0x152   : > { %1148 = vmatprep.subr.bf16.mxu1 %v2891_v44 }
 0x155   : > { %1149 = vmatpush2.bf16.msra.mxu1 %v2889_v45 }
 0x156   : > { %1150 = vmatprep.subr.bf16.mxu1 %v2897_v48 }
 0x159   : > { %1151 = vmatpush2.bf16.msra.mxu1 %v2895_v26 }
 0x15a   : > { %1152 = vmatprep.subr.bf16.mxu1 %v2903_v52 }
 0x15d   : > { %1153 = vmatpush2.bf16.msra.mxu1 %v2901_v23 }
 0x15e   : > { %1154 = vmatprep.subr.bf16.mxu1 %v2909_v55 }
 0x161   : > { %1155 = vmatpush2.bf16.msra.mxu1 %v2907_v0 }
 0x162   : > { %1440 = vmatprep.subr.mxu1 %v3743_v10 }
 0x1e4   : > { %v612_v16 = vpop.f32.mrf.mxu1 }
 0x1e5   : > { %v617_v17 = vmul.f32 0.001953125, %v612_v16  ;;  %v3775_v16 = vld [vmem:[%s4587_s1 + $0xf0] sm:$0xff] }
 0x1e6   : > { %v614_v18 = vpop.f32.mrf.mxu1 }
 0x1e7   : > { %v619_v19 = vadd.f32 1e-05, %v617_v17  ;;  %v618_v20 = vmul.f32 0.001953125, %v614_v18  ;;  %v3781_v18 = vld [vmem:[%s4587_s1 + $0xe8] sm:$0xff] }
 0x1e9   : > { %3108 = vrsqrt.f32 %v619_v19  ;;  %v620_v21 = vadd.f32 1e-05, %v618_v20  ;;  %v2916_v20 = vld [vmem:[%s4590_s4 + $0x270] ss:$8 sps:$4 sm:$0xff]  }
 0x1eb   : > { %3110 = vrsqrt.f32 %v620_v21  ;;  %v3790_v21 = vld [vmem:[%s4587_s1 + $0xe0] sm:$0xff] }
 0x1f6   : > { %v3109_v28 = vpop.eup %3108 }
 0x1f7   : > { %v626_v30 = vrot.slane %v3109_v28, %v3566_v25  ;;  %v2921_v28 = vld [vmem:[%s4590_s4 + $0x264] ss:$8 sps:$4 sm:$0xff]  }
 0x1f8   : > { %v3111_v33 = vpop.eup %3110 }
 0x1f9   : > { %v631_v34 = vmul.f32 %v626_v30, %v3570_v32  ;;  %v630_v37 = vrot.slane %v3111_v33, %v3566_v25  ;;  %v3811_v33 = vld [vmem:[%s4587_s1 + $0xc8] sm:$0xff] }
 0x1fa   : > { %v2951_v25 = vld [vmem:[%s4590_s4 + $0x2c4] ss:$8 sps:$4 sm:$0xff]  }
 0x1fb   : > { %v644_v24 = vmul.f32 %v637_v31, %v631_v34  ;;  %v632_v39 = vmul.f32 %v630_v37, %v3576_v35  ;;  %v3805_v31 = vld [vmem:[%s4587_s1 + $0xd0] sm:$0xff]  ;;  %v2919_v34 = vld [vmem:[%s4590_s4 + $0x260] ss:$8 sps:$4 sm:$0xff]  }
 0x1fc   : > { %v3823_v37 = vld [vmem:[%s4587_s1 + $0xc0] sm:$0xff] }
 0x1fd   : > { %v657_v41 = vadd.f32 %v650_v36, %v644_v24  ;;  %v645_v42 = vmul.f32 %v641_v38, %v632_v39  ;;  %v2924_v36 = vld [vmem:[%s4590_s4 + $0x254] ss:$8 sps:$4 sm:$0xff]   ;;  %v2922_v39 = vld [vmem:[%s4590_s4 + $0x250] ss:$8 sps:$4 sm:$0xff]  }
 0x1fe   : > { %v3829_v38 = vld [vmem:[%s4587_s1 + $0xb8] sm:$0xff]  ;;  %v3835_v24 = vld [vmem:[%s4587_s1 + $0xb0] sm:$0xff] }
 0x1ff   : > { %v659_v43 = vmax.f32 %v657_v41, 0.0  ;;  %v658_v44 = vadd.f32 %v654_v40, %v645_v42  ;;  %v3844_v40 = vld [vmem:[%s4587_s1 + $0xa8] sm:$0xff]  ;;  %v3853_v42 = vld [vmem:[%s4587_s1 + $0xa0] sm:$0xff] }
 0x200   : > { %v2927_v41 = vld [vmem:[%s4590_s4 + $0x244] ss:$8 sps:$4 sm:$0xff]  }
 0x201   : > { %v664_v45 = vrot.slane %v659_v43, 7  ;;  %v660_v46 = vmax.f32 %v658_v44, 0.0  ;;  %v3859_v43 = vld [vmem:[%s4587_s1 + $0x98] sm:$0xff]  ;;  %v3865_v44 = vld [vmem:[%s4587_s1 + $0x90] sm:$0xff] }
 0x203   : > { %668 = vst [vmem:[#allocation2] sm:$0xfe] %v664_v45  ;;  %670 = vst [vmem:[#allocation2 + $0x10] sm:$0x1] %v664_v45  ;;  %v665_v32 = vrot.slane %v660_v46, 7  ;;  %v3874_v46 = vld [vmem:[%s4587_s1 + $0x88] sm:$0xff] }
 0x204   : > { %v2925_v45 = vld [vmem:[%s4590_s4 + $0x240] ss:$8 sps:$4 sm:$0xff]  }
 0x205   : > { %669 = vst [vmem:[#allocation2 + $0x8] sm:$0xfe] %v665_v32  ;;  %671 = vst [vmem:[#allocation2 + $0x18] sm:$0x1] %v665_v32  ;;  %v2930_v32 = vld [vmem:[%s4590_s4 + $0x234] ss:$8 sps:$4 sm:$0xff]  }
 0x20a   : > { %v708_v47 = vld [vmem:[#allocation2] sm:$0xfe]  ;;  %v710_v48 = vld [vmem:[#allocation2 + $0x10] sm:$0x1] }
 0x20b   : > { %v672_v26 = vld [vmem:[#allocation2] sm:$0xff]  ;;  %v712_v49 = vpack.c.bf16 %v710_v48, %v708_v47  ;;  %v3889_v48 = vld [vmem:[%s4587_s1 + $0x78] sm:$0xff] }
 0x20c   : > { %v673_v50 = vld [vmem:[#allocation2 + $0x8] sm:$0xff]  ;;  %v711_v35 = vld [vmem:[#allocation2 + $0x18] sm:$0x1]  ;;  %v674_v54 = vpack.c.bf16 %v672_v26, %v672_v26  ;;  %v3883_v47 = vld [vmem:[%s4587_s1 + $0x80] sm:$0xff] }
 0x20d   : > { %v709_v51 = vld [vmem:[#allocation2 + $0x8] sm:$0xfe]  ;;  %v675_v23 = vpack.c.bf16 %v673_v50, %v673_v50  ;;  %v750_v53 = vshll.u32 %v712_v49, 16  ;;  %v1168_v59 = vld [vmem:[#allocation2 + $0x18] sm:$0x3]  ;;  %v748_v17 = vshrl.u32 %v712_v49, 16 }
 0x20e   : > { %v713_v52 = vpack.c.bf16 %v711_v35, %v709_v51  ;;  %v1166_v55 = vld [vmem:[#allocation2 + $0x8] sm:$0xfc]  ;;  %v3895_v26 = vld [vmem:[%s4587_s1 + $0x70] sm:$0xff]  ;;  %v3913_v35 = vld [vmem:[%s4587_s1 + $0x60] sm:$0xff] }
 0x20f   : > { %1156 = vmatprep.mubr.bf16.mxu1 %v675_v23  ;;  %v752_v5 = vrot.slane %v750_v53, 1  ;;  %v1170_v15 = vpack.c.bf16 %v1168_v59, %v1166_v55  ;;  %v2928_v49 = vld [vmem:[%s4590_s4 + $0x230] ss:$8 sps:$4 sm:$0xff]   ;;  %v3904_v50 = vld [vmem:[%s4587_s1 + $0x68] sm:$0xff]  ;;  %v2936_v55 = vld [vmem:[%s4590_s4 + $0x214] ss:$8 sps:$4 sm:$0xff]  }
 0x210   : > { %v757_v0 = vshll.u32 %v713_v52, 16  ;;  %1157 = vmatmul.mubr.bf16.vlgmr.msra.gmra.mxu1 %v674_v54  ;;  %v755_v13 = vshrl.u32 %v713_v52, 16  ;;  %v2933_v51 = vld [vmem:[%s4590_s4 + $0x224] ss:$8 sps:$4 sm:$0xff]   ;;  %v3919_v23 = vld [vmem:[%s4587_s1 + $0x58] sm:$0xff]  ;;  %v3925_v52 = vld [vmem:[%s4587_s1 + $0x50] sm:$0xff] }
 0x211   : > { %1441 = vmatpush1.msra.mxu1 %v3775_v16  ;;  %v753_v22 = vor.u32 %v752_v5, %v748_v17  ;;  %v1207_v30 = vrot.slane %v1170_v15, 1  ;;  %v2931_v53 = vld [vmem:[%s4590_s4 + $0x220] ss:$8 sps:$4 sm:$0xff]   ;;  %v3955_v5 = vld [vmem:[%s4587_s1 + $0x30] sm:$0xff]  ;;  %v2939_v15 = vld [vmem:[%s4590_s4 + $0x204] ss:$8 sps:$4 sm:$0xff]  }
 0x212   : > { %v759_v14 = vrot.slane %v757_v0, 1  ;;  %1442 = vmatprep.subr.mxu1 %v3781_v18  ;;  %v3934_v54 = vld [vmem:[%s4587_s1 + $0x48] sm:$0xff]  ;;  %v3943_v59 = vld [vmem:[%s4587_s1 + $0x40] sm:$0xff]  ;;  %v3949_v0 = vld [vmem:[%s4587_s1 + $0x38] sm:$0xff] }
 0x213   : > { %1443 = vmatpush1.msra.mxu1 %v3790_v21  ;;  %v3973_v17 = vld [vmem:[%s4587_s1 + $0x20] sm:$0xff] }
 0x214   : > { %v760_v19 = vor.u32 %v759_v14, %v755_v13  ;;  %1444 = vmatprep.subr.mxu1 %v3799_v29  ;;  %v2934_v13 = vld [vmem:[%s4590_s4 + $0x210] ss:$8 sps:$4 sm:$0xff]   ;;  %v3964_v14 = vld [vmem:[%s4587_s1 + $0x28] sm:$0xff] }
 0x215   : > { %1445 = vmatpush1.msra.mxu1 %v3805_v31 }
 0x216   : > { %955 = vmatprep.mubr.bf16.mxu0 %v760_v19  ;;  %1446 = vmatprep.subr.mxu1 %v3811_v33  ;;  %v3979_v19 = vld [vmem:[%s4587_s1 + $0x18] sm:$0xff] }
 0x217   : > { %956 = vmatmul.mubr.bf16.vlgmr.msra.gmra.mxu0 %v753_v22  ;;  %1447 = vmatpush1.msra.mxu1 %v3823_v37  ;;  %v2937_v22 = vld [vmem:[%s4590_s4 + $0x200] ss:$8 sps:$4 sm:$0xff]  }
 0x218   : > { %1371 = vmatpush1.bf16.msra.mxu0 %v2916_v20  ;;  %1402 = vmatprep.mubr.bf16.mxu0 %v1207_v30  ;;  %v3985_v20 = vld [vmem:[%s4587_s1 + $0x10] sm:$0xff] }
 0x219   : > { %1372 = vmatprep.subr.bf16.mxu0 %v2921_v28  ;;  %1448 = vmatprep.subr.mxu1 %v3829_v38  ;;  %v3994_v28 = vld [vmem:[%s4587_s1 + $0x8] sm:$0xff]  ;;  %v2942_v30 = vld [vmem:[%s4590_s4 + $0x2f4] ss:$8 sps:$4 sm:$0xff]  }
 0x21a   : > { %1449 = vmatpush1.msra.mxu1 %v3835_v24 }
 0x21b   : > { %1450 = vmatprep.subr.mxu1 %v3844_v40 }
 0x21c   : > { %1373 = vmatpush1.bf16.msra.mxu0 %v2919_v34  ;;  %1451 = vmatpush1.msra.mxu1 %v3853_v42  ;;  %v4003_v34 = vld [vmem:[%s4587_s1] sm:$0xff] }
 0x21d   : > { %1374 = vmatprep.subr.bf16.mxu0 %v2924_v36  ;;  %1452 = vmatprep.subr.mxu1 %v3859_v43  ;;  %v4009_v36 = vld [vmem:[%s4587_s1 + $0x1f8] sm:$0xff] }
 0x21e   : > { %1453 = vmatpush1.msra.mxu1 %v3865_v44 }
 0x21f   : > { %1454 = vmatprep.subr.mxu1 %v3874_v46 }
 0x220   : > { %1375 = vmatpush1.bf16.msra.mxu0 %v2922_v39  ;;  %1455 = vmatpush1.msra.mxu1 %v3883_v47  ;;  %v4015_v39 = vld [vmem:[%s4587_s1 + $0x1f0] sm:$0xff] }
 0x221   : > { %1376 = vmatprep.subr.bf16.mxu0 %v2927_v41  ;;  %1456 = vmatprep.subr.mxu1 %v3889_v48  ;;  %v2940_v41 = vld [vmem:[%s4590_s4 + $0x2f0] ss:$8 sps:$4 sm:$0xff]  }
 0x222   : > { %1457 = vmatpush1.msra.mxu1 %v3895_v26 }
 0x223   : > { %1458 = vmatprep.subr.mxu1 %v3904_v50 }
 0x224   : > { %1377 = vmatpush1.bf16.msra.mxu0 %v2925_v45  ;;  %1459 = vmatpush1.msra.mxu1 %v3913_v35  ;;  %v4024_v45 = vld [vmem:[%s4587_s1 + $0x1e8] sm:$0xff] }
 0x225   : > { %1378 = vmatprep.subr.bf16.mxu0 %v2930_v32  ;;  %1460 = vmatprep.subr.mxu1 %v3919_v23  ;;  %v2945_v32 = vld [vmem:[%s4590_s4 + $0x2e4] ss:$8 sps:$4 sm:$0xff]  }
 0x226   : > { %1461 = vmatpush1.msra.mxu1 %v3925_v52 }
 0x227   : > { %1462 = vmatprep.subr.mxu1 %v3934_v54 }
 0x228   : > { %1379 = vmatpush1.bf16.msra.mxu0 %v2928_v49  ;;  %1463 = vmatpush1.msra.mxu1 %v3943_v59  ;;  %v4033_v49 = vld [vmem:[%s4587_s1 + $0x1e0] sm:$0xff] }
 0x229   : > { %1380 = vmatprep.subr.bf16.mxu0 %v2933_v51  ;;  %1464 = vmatprep.subr.mxu1 %v3949_v0  ;;  %v4039_v51 = vld [vmem:[%s4587_s1 + $0x1d8] sm:$0xff] }
 0x22a   : > { %1465 = vmatpush1.msra.mxu1 %v3955_v5 }
 0x22b   : > { %1466 = vmatprep.subr.mxu1 %v3964_v14 }
 0x22c   : > { %1381 = vmatpush1.bf16.msra.mxu0 %v2931_v53  ;;  %1467 = vmatpush1.msra.mxu1 %v3973_v17  ;;  %v4045_v53 = vld [vmem:[%s4587_s1 + $0x1d0] sm:$0xff] }
 0x22d   : > { %1382 = vmatprep.subr.bf16.mxu0 %v2936_v55  ;;  %1468 = vmatprep.subr.mxu1 %v3979_v19  ;;  %v2943_v55 = vld [vmem:[%s4590_s4 + $0x2e0] ss:$8 sps:$4 sm:$0xff]  }
 0x22e   : > { %1469 = vmatpush1.msra.mxu1 %v3985_v20 }
 0x22f   : > { %1470 = vmatprep.subr.mxu1 %v3994_v28 }
 0x230   : > { %1383 = vmatpush1.bf16.msra.mxu0 %v2934_v13  ;;  %1471 = vmatpush1.msra.mxu1 %v4003_v34  ;;  %v4054_v13 = vld [vmem:[%s4587_s1 + $0x1c8] sm:$0xff] }
 0x231   : > { %1384 = vmatprep.subr.bf16.mxu0 %v2939_v15  ;;  %1472 = vmatprep.subr.mxu1 %v4009_v36  ;;  %v2948_v15 = vld [vmem:[%s4590_s4 + $0x2d4] ss:$8 sps:$4 sm:$0xff]  }
 0x232   : > { %1473 = vmatpush2.msra.mxu1 %v4015_v39 }
 0x233   : > { %1474 = vmatprep.subr.mxu1 %v4024_v45 }
 0x234   : > { %1385 = vmatpush1.bf16.msra.mxu0 %v2937_v22  ;;  %1475 = vmatpush2.msra.mxu1 %v4033_v49  ;;  %v4063_v22 = vld [vmem:[%s4587_s1 + $0x1c0] sm:$0xff] }
 0x235   : > { %1386 = vmatprep.subr.bf16.mxu0 %v2942_v30  ;;  %1476 = vmatprep.subr.mxu1 %v4039_v51  ;;  %v4069_v30 = vld [vmem:[%s4587_s1 + $0x1b8] sm:$0xff] }
 0x236   : > { %1477 = vmatpush2.msra.mxu1 %v4045_v53 }
 0x237   : > { %1478 = vmatprep.subr.mxu1 %v4054_v13 }
 0x238   : > { %1387 = vmatpush2.bf16.msra.mxu0 %v2940_v41  ;;  %1479 = vmatpush2.msra.mxu1 %v4063_v22  ;;  %v4075_v41 = vld [vmem:[%s4587_s1 + $0x1b0] sm:$0xff] }
 0x239   : > { %1388 = vmatprep.subr.bf16.mxu0 %v2945_v32  ;;  %1480 = vmatprep.subr.mxu1 %v4069_v30  ;;  %4607 = vst [vmem:[#allocation5_spill] sm:$0xff] %v4075_v41  ;;  %v2946_v32 = vld [vmem:[%s4590_s4 + $0x2d0] ss:$8 sps:$4 sm:$0xff]  }
 0x23a   : > { %1481 = vmatpush2.msra.mxu1 %v4075_v41  ;;  %v4099_v41 = vld [vmem:[%s4587_s1 + $0x198] sm:$0xff] }
 0x23b   : > { %1482 = vmatprep.subr.mxu1 %v4084_v27  ;;  %4610 = vst [vmem:[#allocation8_spill] sm:$0xff] %v4099_v41  ;;  %v2949_v27 = vld [vmem:[%s4590_s4 + $0x2c0] ss:$8 sps:$4 sm:$0xff]  }
 0x23c   : > { %1389 = vmatpush2.bf16.msra.mxu0 %v2943_v55  ;;  %v4093_v55 = vld [vmem:[%s4587_s1 + $0x1a0] sm:$0xff] }
 0x23d   : > { %1390 = vmatprep.subr.bf16.mxu0 %v2948_v15  ;;  %4609 = vst [vmem:[#allocation7_spill] sm:$0xff] %v4093_v55  ;;  %1483 = vmatpush2.msra.mxu1 %v4093_v55  ;;  %v4105_v15 = vld [vmem:[%s4587_s1 + $0x190] sm:$0xff]  ;;  %v4114_v55 = vld [vmem:[%s4587_s1 + $0x188] sm:$0xff] }
 0x23e   : > { %1484 = vmatprep.subr.mxu1 %v4099_v41  ;;  %v2954_v41 = vld [vmem:[%s4590_s4 + $0x2b4] ss:$8 sps:$4 sm:$0xff]  }
 0x23f   : > { %1485 = vmatpush2.msra.mxu1 %v4105_v15 }
 0x240   : > { %1391 = vmatpush2.bf16.msra.mxu0 %v2946_v32  ;;  %1486 = vmatprep.subr.mxu1 %v4114_v55  ;;  %v2952_v32 = vld [vmem:[%s4590_s4 + $0x2b0] ss:$8 sps:$4 sm:$0xff]  }
 0x241   : > { %1392 = vmatprep.subr.bf16.mxu0 %v2951_v25  ;;  %1487 = vmatpush2.msra.mxu1 %v3418_v56  ;;  %v2957_v25 = vld [vmem:[%s4590_s4 + $0x2a4] ss:$8 sps:$4 sm:$0xff]   ;;  %v2955_v56 = vld [vmem:[%s4590_s4 + $0x2a0] ss:$8 sps:$4 sm:$0xff]  }
 0x242   : > { %1488 = vmatprep.subr.mxu1 %v3423_v57  ;;  %v2960_v57 = vld [vmem:[%s4590_s4 + $0x294] ss:$8 sps:$4 sm:$0xff]  }
 0x243   : > { %1489 = vmatpush2.msra.mxu1 %v3428_v58  ;;  %v2958_v58 = vld [vmem:[%s4590_s4 + $0x290] ss:$8 sps:$4 sm:$0xff]  }
 0x244   : > { %1393 = vmatpush2.bf16.msra.mxu0 %v2949_v27  ;;  %1490 = vmatprep.subr.mxu1 %v3434_v60  ;;  %v2963_v60 = vld [vmem:[%s4590_s4 + $0x284] ss:$8 sps:$4 sm:$0xff]  }
 0x245   : > { %1394 = vmatprep.subr.bf16.mxu0 %v2954_v41  ;;  %1491 = vmatpush2.msra.mxu1 %v3439_v61  ;;  %v1165_v61 = vld [vmem:[#allocation2] sm:$0xfc] }
 0x246   : > { %1492 = vmatprep.subr.mxu1 %v3445_v62  ;;  %v1167_v62 = vld [vmem:[#allocation2 + $0x10] sm:$0x3]  ;;  %v3167_v27 = vld [vmem:[%s4587_s1 + $0x160] sm:$0xff] }
 0x247   : > { %1493 = vmatpush2.msra.mxu1 %v3451_v63  ;;  %v2961_v63 = vld [vmem:[%s4590_s4 + $0x280] ss:$8 sps:$4 sm:$0xff]  }
 0x248   : > { %1395 = vmatpush2.bf16.msra.mxu0 %v2952_v32  ;;  %1494 = vmatprep.subr.mxu1 %v3458_v1  ;;  %v1169_v1 = vpack.c.bf16 %v1167_v62, %v1165_v61  ;;  %v2978_v61 = vld [vmem:[%s4594_s8 + $0x164] ss:$8 sps:$4 sm:$0xff]   ;;  %v2982_v62 = vld [vmem:[%s4594_s8 + $0x150] ss:$8 sps:$4 sm:$0xff]  }
 0x249   : > { %1396 = vmatprep.subr.bf16.mxu0 %v2957_v25  ;;  %1495 = vmatpush2.msra.mxu1 %v3465_v2 }
 0x24a   : > { %1496 = vmatprep.subr.mxu1 %v3472_v3  ;;  %v1206_v2 = vrot.slane %v1169_v1, 1  ;;  %v4611_v3 = vld [vmem:[#allocation5_spill] sm:$0xff]  ;;  %v2988_v1 = vld [vmem:[%s4594_s8 + $0x140] ss:$8 sps:$4 sm:$0xff]  }
 0x24b   : > { %1497 = vmatpush2.msra.mxu1 %v3479_v4  ;;  %v4612_v4 = vld [vmem:[#allocation6_spill] sm:$0xff] }
 0x24c   : > { %1397 = vmatpush2.bf16.msra.mxu0 %v2955_v56  ;;  %1498 = vmatprep.subr.mxu1 %v3486_v6  ;;  %v4613_v6 = vld [vmem:[#allocation7_spill] sm:$0xff]  ;;  %v2966_v56 = vld [vmem:[%s4594_s8 + $0x74] ss:$8 sps:$4 sm:$0xff]  }
 0x24d   : > { %1398 = vmatprep.subr.bf16.mxu0 %v2960_v57  ;;  %1499 = vmatpush2.msra.mxu1 %v3493_v7  ;;  %v4614_v7 = vld [vmem:[#allocation8_spill] sm:$0xff]  ;;  %v2970_v57 = vld [vmem:[%s4594_s8 + $0x170] ss:$8 sps:$4 sm:$0xff]  }
 0x24e   : > { %1500 = vmatprep.subr.mxu1 %v3500_v8  ;;  %v3163_v8 = vld [vmem:[%s4587_s1 + $0x180] sm:$0xff] }
 0x24f   : > { %1501 = vmatpush2.msra.mxu1 %v3507_v9  ;;  %v3164_v9 = vld [vmem:[%s4587_s1 + $0x178] sm:$0xff] }
 0x250   : > { %1399 = vmatpush2.bf16.msra.mxu0 %v2958_v58  ;;  %1502 = vmatprep.subr.mxu1 %v3514_v11  ;;  %v3165_v11 = vld [vmem:[%s4587_s1 + $0x170] sm:$0xff] }
 0x251   : > { %1400 = vmatprep.subr.bf16.mxu0 %v2963_v60  ;;  %1503 = vmatpush2.msra.mxu1 %v3521_v12  ;;  %v2972_v58 = vld [vmem:[%s4594_s8 + $0x174] ss:$8 sps:$4 sm:$0xff]   ;;  %v2976_v60 = vld [vmem:[%s4594_s8 + $0x160] ss:$8 sps:$4 sm:$0xff]  }
 0x252   : > { %1914 = vmatprep.subr.bf16.mxu1 %v2972_v58  ;;  %v3029_v58 = vld [vmem:[%s4594_s8 + $0xc4] ss:$8 sps:$4 sm:$0xff]  }
 0x254   : > { %1401 = vmatpush2.bf16.msra.mxu0 %v2961_v63  ;;  %v2984_v63 = vld [vmem:[%s4594_s8 + $0x154] ss:$8 sps:$4 sm:$0xff]  }
 0x255   : > { %1537 = vmatprep.subr.mxu0 %v3743_v10  ;;  %v3166_v10 = vld [vmem:[%s4587_s1 + $0x168] sm:$0xff] }
 0x257   : > { %1403 = vmatmul.mubr.bf16.vlgmr.msra.gmra.mxu0 %v1206_v2  ;;  %v2990_v2 = vld [vmem:[%s4594_s8 + $0x144] ss:$8 sps:$4 sm:$0xff]  }
 0x258   : > { %1538 = vmatpush1.msra.mxu0 %v3775_v16  ;;  %v3168_v16 = vld [vmem:[%s4587_s1 + $0x158] sm:$0xff] }
 0x259   : > { %1539 = vmatprep.subr.mxu0 %v3781_v18  ;;  %v3169_v18 = vld [vmem:[%s4587_s1 + $0x150] sm:$0xff] }
 0x25a   : > { %1540 = vmatpush1.msra.mxu0 %v3790_v21  ;;  %v3170_v21 = vld [vmem:[%s4587_s1 + $0x148] sm:$0xff] }
 0x25b   : > { %1541 = vmatprep.subr.mxu0 %v3799_v29  ;;  %v3171_v29 = vld [vmem:[%s4587_s1 + $0x140] sm:$0xff] }
 0x25c   : > { %1542 = vmatpush1.msra.mxu0 %v3805_v31  ;;  %v3172_v31 = vld [vmem:[%s4587_s1 + $0x138] sm:$0xff] }
 0x25d   : > { %1543 = vmatprep.subr.mxu0 %v3811_v33  ;;  %v3173_v33 = vld [vmem:[%s4587_s1 + $0x130] sm:$0xff] }
 0x25e   : > { %1544 = vmatpush1.msra.mxu0 %v3823_v37  ;;  %v3174_v37 = vld [vmem:[%s4587_s1 + $0x128] sm:$0xff] }
 0x25f   : > { %1545 = vmatprep.subr.mxu0 %v3829_v38  ;;  %v3175_v38 = vld [vmem:[%s4587_s1 + $0x120] sm:$0xff] }
 0x260   : > { %1546 = vmatpush1.msra.mxu0 %v3835_v24  ;;  %v3176_v24 = vld [vmem:[%s4587_s1 + $0x118] sm:$0xff] }
 0x261   : > { %1547 = vmatprep.subr.mxu0 %v3844_v40  ;;  %v3177_v40 = vld [vmem:[%s4587_s1 + $0x110] sm:$0xff] }
 0x262   : > { %1548 = vmatpush1.msra.mxu0 %v3853_v42  ;;  %v3178_v42 = vld [vmem:[%s4587_s1 + $0x108] sm:$0xff] }
 0x263   : > { %1549 = vmatprep.subr.mxu0 %v3859_v43 }
 0x264   : > { %1550 = vmatpush1.msra.mxu0 %v3865_v44 }
 0x265   : > { %1551 = vmatprep.subr.mxu0 %v3874_v46 }
 0x266   : > { %1552 = vmatpush1.msra.mxu0 %v3883_v47 }
 0x267   : > { %1553 = vmatprep.subr.mxu0 %v3889_v48 }
 0x268   : > { %1554 = vmatpush1.msra.mxu0 %v3895_v26 }
 0x269   : > { %1555 = vmatprep.subr.mxu0 %v3904_v50 }
 0x26a   : > { %1556 = vmatpush1.msra.mxu0 %v3913_v35 }
 0x26b   : > { %1557 = vmatprep.subr.mxu0 %v3919_v23 }
 0x26c   : > { %1558 = vmatpush1.msra.mxu0 %v3925_v52  ;;  %v661_v52 = vld [vmem:[%s4591_s5] sm:$0x3] }
 0x26d   : > { %1559 = vmatprep.subr.mxu0 %v3934_v54  ;;  %v4615_v54 = vld [vmem:[#allocation3_spill] sm:$0xff] }
 0x26e   : > { %1560 = vmatpush1.msra.mxu0 %v3943_v59  ;;  %v1417_v59 = vrot.slane %v661_v52, %v4615_v54 }
 0x26f   : > { %1561 = vmatprep.subr.mxu0 %v3949_v0 }
 0x270   : > { %1562 = vmatpush1.msra.mxu0 %v3955_v5 }
 0x271   : > { %1563 = vmatprep.subr.mxu0 %v3964_v14 }
 0x272   : > { %1564 = vmatpush1.msra.mxu0 %v3973_v17  ;;  %v4616_v17 = vld [vmem:[#allocation4_spill] sm:$0xff] }
 0x273   : > { %1565 = vmatprep.subr.mxu0 %v3979_v19 }
 0x274   : > { %1566 = vmatpush1.msra.mxu0 %v3985_v20 }
 0x275   : > { %1567 = vmatprep.subr.mxu0 %v3994_v28 }
 0x276   : > { %1568 = vmatpush1.msra.mxu0 %v4003_v34 }
 0x277   : > { %1569 = vmatprep.subr.mxu0 %v4009_v36 }
 0x278   : > { %1570 = vmatpush2.msra.mxu0 %v4015_v39 }
 0x279   : > { %1571 = vmatprep.subr.mxu0 %v4024_v45 }
 0x27a   : > { %1572 = vmatpush2.msra.mxu0 %v4033_v49 }
 0x27b   : > { %1573 = vmatprep.subr.mxu0 %v4039_v51 }
 0x27c   : > { %1574 = vmatpush2.msra.mxu0 %v4045_v53 }
 0x27d   : > { %1575 = vmatprep.subr.mxu0 %v4054_v13 }
 0x27e   : > { %1576 = vmatpush2.msra.mxu0 %v4063_v22 }
 0x27f   : > { %1577 = vmatprep.subr.mxu0 %v4069_v30 }
 0x280   : > { %1578 = vmatpush2.msra.mxu0 %v4611_v3 }
 0x281   : > { %1579 = vmatprep.subr.mxu0 %v4612_v4 }
 0x282   : > { %1580 = vmatpush2.msra.mxu0 %v4613_v6 }
 0x283   : > { %1581 = vmatprep.subr.mxu0 %v4614_v7 }
 0x284   : > { %1582 = vmatpush2.msra.mxu0 %v4105_v15 }
 0x285   : > { %1583 = vmatprep.subr.mxu0 %v4114_v55 }
 0x286   : > { %1584 = vmatpush2.msra.mxu0 %v3163_v8 }
 0x287   : > { %1585 = vmatprep.subr.mxu0 %v3164_v9 }
 0x288   : > { %1586 = vmatpush2.msra.mxu0 %v3165_v11 }
 0x289   : > { %1587 = vmatprep.subr.mxu0 %v3166_v10 }
 0x28a   : > { %1588 = vmatpush2.msra.mxu0 %v3167_v27 }
 0x28b   : > { %1589 = vmatprep.subr.mxu0 %v3168_v16 }
 0x28c   : > { %1590 = vmatpush2.msra.mxu0 %v3169_v18 }
 0x28d   : > { %1591 = vmatprep.subr.mxu0 %v3170_v21 }
 0x28e   : > { %1592 = vmatpush2.msra.mxu0 %v3171_v29 }
 0x28f   : > { %1593 = vmatprep.subr.mxu0 %v3172_v31 }
 0x290   : > { %1594 = vmatpush2.msra.mxu0 %v3173_v33 }
 0x291   : > { %1595 = vmatprep.subr.mxu0 %v3174_v37 }
 0x292   : > { %1596 = vmatpush2.msra.mxu0 %v3175_v38 }
 0x293   : > { %1597 = vmatprep.subr.mxu0 %v3176_v24 }
 0x294   : > { %1598 = vmatpush2.msra.mxu0 %v3177_v40 }
 0x295   : > { %1599 = vmatprep.subr.mxu0 %v3178_v42 }
 0x296   : > { %1600 = vmatpush2.msra.mxu0 %v3521_v12  ;;  %v1421_v12 = vrot.slane %v661_v52, %v4616_v17  ;;  %v2987_v52 = vld [vmem:[%s4594_s8 + $0x34] ss:$8 sps:$4 sm:$0xff]  }
 0x297   : > { %2115 = vmatprep.subr.bf16.mxu0 %v2966_v56  ;;  %v3026_v56 = vld [vmem:[%s4594_s8 + $0x1e4] ss:$8 sps:$4 sm:$0xff]  }
 0x2d0   : > { %v1158_v43 = vpop.f32.mrf.mxu1 }
 0x2d2   : > { %v1160_v44 = vpop.f32.mrf.mxu1 }
 0x2d4   : > { %v1162_v46 = vpop.f32.mrf.mxu1 }
 0x2d6   : > { %v1163_v48 = vpop.f32.mrf.mxu1 }
 0x2d7   : > { %v957_v47 = vpop.f32.mrf.mxu0  ;;  %v2967_v48 = vld [vmem:[%s4594_s8 + $0x60] ss:$8 sps:$4 sm:$0xff]  }
 0x2d8   : > { %v1159_v26 = vadd.f32 %v1158_v43, %v957_v47  ;;  %v2969_v47 = vld [vmem:[%s4594_s8 + $0x64] ss:$8 sps:$4 sm:$0xff]  }
 0x2d9   : > { %v959_v50 = vpop.f32.mrf.mxu0 }
 0x2da   : > { %v1161_v5 = vadd.f32 %v1160_v44, %v959_v50  ;;  %v2964_v44 = vld [vmem:[%s4594_s8 + $0x70] ss:$8 sps:$4 sm:$0xff]  }
 0x2db   : > { %v961_v35 = vpop.f32.mrf.mxu0  ;;  %v2973_v50 = vld [vmem:[%s4594_s8 + $0x50] ss:$8 sps:$4 sm:$0xff]  }
 0x2dc   : > { %v2981_v35 = vld [vmem:[%s4594_s8 + $0x44] ss:$8 sps:$4 sm:$0xff]  }
 0x2dd   : > { %v962_v23 = vpop.f32.mrf.mxu0 }
 0x2de   : > { %v2979_v23 = vld [vmem:[%s4594_s8 + $0x40] ss:$8 sps:$4 sm:$0xff]  }
 0x317   : > { %v1404_v0 = vpop.f32.mrf.mxu0 }
 0x318   : > { %v1411_v14 = vadd.f32 %v1404_v0, %v1159_v26  ;;  %v2975_v26 = vld [vmem:[%s4594_s8 + $0x54] ss:$8 sps:$4 sm:$0xff]   ;;  %v2993_v0 = vld [vmem:[%s4594_s8 + $0x24] ss:$8 sps:$4 sm:$0xff]  }
 0x319   : > { %v1406_v19 = vpop.f32.mrf.mxu0 }
 0x31a   : > { %v1424_v20 = vadd.f32 %v1417_v59, %v1411_v14  ;;  %v1412_v28 = vadd.f32 %v1406_v19, %v1161_v5  ;;  %v2985_v59 = vld [vmem:[%s4594_s8 + $0x30] ss:$8 sps:$4 sm:$0xff]   ;;  %v2991_v5 = vld [vmem:[%s4594_s8 + $0x20] ss:$8 sps:$4 sm:$0xff]   ;;  %v2996_v14 = vld [vmem:[%s4594_s8 + $0x134] ss:$8 sps:$4 sm:$0xff]  }
 0x31b   : > { %v1408_v34 = vpop.f32.mrf.mxu0  ;;  %v2999_v19 = vld [vmem:[%s4594_s8 + $0x14] ss:$8 sps:$4 sm:$0xff]  }
 0x31c   : > { %v1428_v36 = vrot.slane %v1424_v20, 4  ;;  %v1425_v39 = vadd.f32 %v1421_v12, %v1412_v28  ;;  %v2994_v12 = vld [vmem:[%s4594_s8 + $0x130] ss:$8 sps:$4 sm:$0xff]   ;;  %v3002_v28 = vld [vmem:[%s4594_s8 + $0x124] ss:$8 sps:$4 sm:$0xff]  }
 0x31d   : > { %v1409_v45 = vpop.f32.mrf.mxu0  ;;  %v3000_v34 = vld [vmem:[%s4594_s8 + $0x120] ss:$8 sps:$4 sm:$0xff]  }
 0x31e   : > { %v1429_v49 = vadd.f32 %v1428_v36, %v1424_v20  ;;  %v1434_v51 = vrot.slane %v1425_v39, 4  ;;  %v3005_v36 = vld [vmem:[%s4594_s8 + $0x4] ss:$8 sps:$4 sm:$0xff]   ;;  %v3008_v45 = vld [vmem:[%s4594_s8 + $0x114] ss:$8 sps:$4 sm:$0xff]  }
 0x320   : > { %v1430_v53 = vrot.slane %v1429_v49, 2  ;;  %v1435_v13 = vadd.f32 %v1434_v51, %v1425_v39  ;;  %v3011_v51 = vld [vmem:[%s4594_s8 + $0xf4] ss:$8 sps:$4 sm:$0xff]  }
 0x322   : > { %v1431_v22 = vadd.f32 %v1430_v53, %v1429_v49  ;;  %v1436_v30 = vrot.slane %v1435_v13, 2  ;;  %v3006_v49 = vld [vmem:[%s4594_s8 + $0x110] ss:$8 sps:$4 sm:$0xff]  }
 0x323   : > { %v3009_v53 = vld [vmem:[%s4594_s8 + $0xf0] ss:$8 sps:$4 sm:$0xff]  }
 0x324   : > { %v1437_v41 = vadd.f32 %v1436_v30, %v1435_v13  ;;  %v1432_v55 = vrot.slane %v1431_v22, 1  ;;  %v3014_v13 = vld [vmem:[%s4594_s8 + $0x104] ss:$8 sps:$4 sm:$0xff]  }
 0x325   : > { %v3017_v30 = vld [vmem:[%s4594_s8 + $0xe4] ss:$8 sps:$4 sm:$0xff]  }
 0x326   : > { %v1438_v15 = vrot.slane %v1437_v41, 1  ;;  %v1433_v25 = vadd.f32 %v1432_v55, %v1431_v22  ;;  %v3012_v22 = vld [vmem:[%s4594_s8 + $0x100] ss:$8 sps:$4 sm:$0xff]   ;;  %v3020_v55 = vld [vmem:[%s4594_s8 + $0x1f4] ss:$8 sps:$4 sm:$0xff]  }
 0x328   : > { %v1439_v32 = vadd.f32 %v1438_v15, %v1437_v41  ;;  %v3015_v41 = vld [vmem:[%s4594_s8 + $0xe0] ss:$8 sps:$4 sm:$0xff]   ;;  %v3018_v15 = vld [vmem:[%s4594_s8 + $0x1f0] ss:$8 sps:$4 sm:$0xff]  }
 0x32a   : > { %1504 = vmatprep.mubr.f32.mxu1 %v1439_v32  ;;  %v3023_v32 = vld [vmem:[%s4594_s8 + $0xd4] ss:$8 sps:$4 sm:$0xff]  }
 0x32b   : > { %1505 = vmatmul.mubr.f32.vlgmr.msra.gmra.mxu1 %v1433_v25  ;;  %v3021_v25 = vld [vmem:[%s4594_s8 + $0xd0] ss:$8 sps:$4 sm:$0xff]  }
 0x32c   : > { %1915 = vmatpush1.bf16.msra.mxu1 %v2970_v57  ;;  %v3024_v57 = vld [vmem:[%s4594_s8 + $0x1e0] ss:$8 sps:$4 sm:$0xff]  }
 0x32d   : > { %1916 = vmatprep.subr.bf16.mxu1 %v2978_v61  ;;  %v3032_v61 = vld [vmem:[%s4594_s8 + $0x1d4] ss:$8 sps:$4 sm:$0xff]  }
 0x330   : > { %1917 = vmatpush1.bf16.msra.mxu1 %v2976_v60  ;;  %v3027_v60 = vld [vmem:[%s4594_s8 + $0xc0] ss:$8 sps:$4 sm:$0xff]  }
 0x331   : > { %1918 = vmatprep.subr.bf16.mxu1 %v2984_v63  ;;  %v3035_v63 = vld [vmem:[%s4594_s8 + $0xb4] ss:$8 sps:$4 sm:$0xff]  }
 0x334   : > { %1919 = vmatpush1.bf16.msra.mxu1 %v2982_v62  ;;  %v3030_v62 = vld [vmem:[%s4594_s8 + $0x1d0] ss:$8 sps:$4 sm:$0xff]  }
 0x335   : > { %1920 = vmatprep.subr.bf16.mxu1 %v2990_v2  ;;  %v3038_v2 = vld [vmem:[%s4594_s8 + $0x1c4] ss:$8 sps:$4 sm:$0xff]  }
 0x338   : > { %1921 = vmatpush1.bf16.msra.mxu1 %v2988_v1  ;;  %v3033_v1 = vld [vmem:[%s4594_s8 + $0xb0] ss:$8 sps:$4 sm:$0xff]  }
 0x339   : > { %1922 = vmatprep.subr.bf16.mxu1 %v2996_v14 }
 0x33c   : > { %1923 = vmatpush1.bf16.msra.mxu1 %v2994_v12 }
 0x33d   : > { %1924 = vmatprep.subr.bf16.mxu1 %v3002_v28 }
 0x340   : > { %1925 = vmatpush1.bf16.msra.mxu1 %v3000_v34 }
 0x341   : > { %1926 = vmatprep.subr.bf16.mxu1 %v3008_v45 }
 0x344   : > { %1927 = vmatpush1.bf16.msra.mxu1 %v3006_v49 }
 0x345   : > { %1928 = vmatprep.subr.bf16.mxu1 %v3014_v13 }
 0x348   : > { %1929 = vmatpush1.bf16.msra.mxu1 %v3012_v22 }
 0x349   : > { %1930 = vmatprep.subr.bf16.mxu1 %v3020_v55 }
 0x34c   : > { %1931 = vmatpush2.bf16.msra.mxu1 %v3018_v15 }
 0x34d   : > { %1932 = vmatprep.subr.bf16.mxu1 %v3026_v56 }
 0x350   : > { %1933 = vmatpush2.bf16.msra.mxu1 %v3024_v57 }
 0x351   : > { %1934 = vmatprep.subr.bf16.mxu1 %v3032_v61 }
 0x354   : > { %1935 = vmatpush2.bf16.msra.mxu1 %v3030_v62 }
 0x355   : > { %1936 = vmatprep.subr.bf16.mxu1 %v3038_v2 }
 0x3eb   : > { %v1506_v3 = vpop.f32.mrf.mxu1 }
 0x3ec   : > { %v1511_v4 = vmul.f32 0.001953125, %v1506_v3  ;;  %v3036_v3 = vld [vmem:[%s4594_s8 + $0x1c0] ss:$8 sps:$4 sm:$0xff]  }
 0x3ed   : > { %v1508_v6 = vpop.f32.mrf.mxu1  ;;  %1937 = vmatpush2.bf16.msra.mxu1 %v3036_v3  ;;  %v3060_v3 = vld [vmem:[%s4594_s8 + $0x270] ss:$8 sps:$4 sm:$0xff]  }
 0x3ee   : > { %v1516_v7 = vrot.slane %v1511_v4, %v4615_v54  ;;  %v1512_v8 = vmul.f32 0.001953125, %v1508_v6  ;;  %v3041_v4 = vld [vmem:[%s4594_s8 + $0xa4] ss:$8 sps:$4 sm:$0xff]   ;;  %v3039_v6 = vld [vmem:[%s4594_s8 + $0xa0] ss:$8 sps:$4 sm:$0xff]  }
 0x3f0   : > { %v4287_v9 = vsub.f32 %v1424_v20, %v1516_v7  ;;  %v1520_v11 = vrot.slane %v1512_v8, %v4615_v54  ;;  %v2997_v20 = vld [vmem:[%s4594_s8 + $0x10] ss:$8 sps:$4 sm:$0xff]   ;;  %v3044_v7 = vld [vmem:[%s4594_s8 + $0x1b4] ss:$8 sps:$4 sm:$0xff]  }
 0x3f1   : > { %v3042_v8 = vld [vmem:[%s4594_s8 + $0x1b0] ss:$8 sps:$4 sm:$0xff]   ;;  %1938 = vmatprep.subr.bf16.mxu1 %v3044_v7 }
 0x3f2   : > { %v1523_v10 = vmul.f32 %v4287_v9, %v4287_v9  ;;  %v4292_v27 = vsub.f32 %v1425_v39, %v1520_v11  ;;  %v3003_v39 = vld [vmem:[%s4594_s8] ss:$8 sps:$4 sm:$0xff]   ;;  %v3045_v11 = vld [vmem:[%s4594_s8 + $0x90] ss:$8 sps:$4 sm:$0xff]   ;;  %1939 = vmatpush2.bf16.msra.mxu1 %v3042_v8 }
 0x3f3   : > { %v3063_v8 = vld [vmem:[%s4594_s8 + $0x260] ss:$8 sps:$4 sm:$0xff]  }
 0x3f4   : > { %v1525_v16 = vrot.slane %v1523_v10, 4  ;;  %v1524_v18 = vmul.f32 %v4292_v27, %v4292_v27 }
 0x3f6   : > { %v1526_v21 = vadd.f32 %v1525_v16, %v1523_v10  ;;  %v1531_v29 = vrot.slane %v1524_v18, 4  ;;  %v3047_v10 = vld [vmem:[%s4594_s8 + $0x94] ss:$8 sps:$4 sm:$0xff]   ;;  %v3048_v16 = vld [vmem:[%s4594_s8 + $0x1a0] ss:$8 sps:$4 sm:$0xff]  }
 0x3f8   : > { %v1527_v31 = vrot.slane %v1526_v21, 2  ;;  %v1532_v33 = vadd.f32 %v1531_v29, %v1524_v18  ;;  %v3050_v18 = vld [vmem:[%s4594_s8 + $0x1a4] ss:$8 sps:$4 sm:$0xff]   ;;  %v3056_v29 = vld [vmem:[%s4594_s8 + $0x194] ss:$8 sps:$4 sm:$0xff]  }
 0x3f9   : > { %1940 = vmatprep.subr.bf16.mxu1 %v3050_v18  ;;  %v3069_v18 = vld [vmem:[%s4594_s8 + $0x240] ss:$8 sps:$4 sm:$0xff]  }
 0x3fa   : > { %v1533_v37 = vrot.slane %v1532_v33, 2  ;;  %v1528_v38 = vadd.f32 %v1527_v31, %v1526_v21  ;;  %v3053_v21 = vld [vmem:[%s4594_s8 + $0x84] ss:$8 sps:$4 sm:$0xff]   ;;  %v3051_v31 = vld [vmem:[%s4594_s8 + $0x80] ss:$8 sps:$4 sm:$0xff]   ;;  %1941 = vmatpush2.bf16.msra.mxu1 %v3048_v16 }
 0x3fb   : > { %1942 = vmatprep.subr.bf16.mxu1 %v3056_v29  ;;  %v3071_v16 = vld [vmem:[%s4594_s8 + $0x244] ss:$8 sps:$4 sm:$0xff]   ;;  %v3072_v29 = vld [vmem:[%s4594_s8 + $0x230] ss:$8 sps:$4 sm:$0xff]  }
 0x3fc   : > { %v1534_v24 = vadd.f32 %v1533_v37, %v1532_v33  ;;  %v1529_v40 = vrot.slane %v1528_v38, 1  ;;  %v3054_v33 = vld [vmem:[%s4594_s8 + $0x190] ss:$8 sps:$4 sm:$0xff]   ;;  %v3059_v37 = vld [vmem:[%s4594_s8 + $0x184] ss:$8 sps:$4 sm:$0xff]  }
 0x3fe   : > { %v1535_v42 = vrot.slane %v1534_v24, 1  ;;  %v1530_v46 = vadd.f32 %v1529_v40, %v1528_v38  ;;  %1943 = vmatpush2.bf16.msra.mxu1 %v3054_v33  ;;  %v3057_v38 = vld [vmem:[%s4594_s8 + $0x180] ss:$8 sps:$4 sm:$0xff]  }
 0x3ff   : > { %1944 = vmatprep.subr.bf16.mxu1 %v3059_v37  ;;  %v3075_v33 = vld [vmem:[%s4594_s8 + $0x220] ss:$8 sps:$4 sm:$0xff]   ;;  %v3080_v37 = vld [vmem:[%s4594_s8 + $0x214] ss:$8 sps:$4 sm:$0xff]  }
 0x400   : > { %v1536_v43 = vadd.f32 %v1535_v42, %v1534_v24  ;;  %v3062_v24 = vld [vmem:[%s4594_s8 + $0x274] ss:$8 sps:$4 sm:$0xff]  }
 0x402   : > { %1601 = vmatprep.mubr.f32.mxu0 %v1536_v43  ;;  %1945 = vmatpush2.bf16.msra.mxu1 %v3057_v38  ;;  %v3078_v38 = vld [vmem:[%s4594_s8 + $0x210] ss:$8 sps:$4 sm:$0xff]  }
 0x403   : > { %1602 = vmatmul.mubr.f32.vlgmr.msra.gmra.mxu0 %v1530_v46  ;;  %2361 = vmatprep.subr.bf16.mxu1 %v3062_v24  ;;  %v3083_v24 = vld [vmem:[%s4594_s8 + $0x204] ss:$8 sps:$4 sm:$0xff]  }
 0x404   : > { %2116 = vmatpush1.bf16.msra.mxu0 %v2964_v44 }
 0x405   : > { %2117 = vmatprep.subr.bf16.mxu0 %v2969_v47 }
 0x408   : > { %2118 = vmatpush1.bf16.msra.mxu0 %v2967_v48  ;;  %v1426_v48 = vld [vmem:[%s4592_s6] sm:$0x3] }
 0x409   : > { %2119 = vmatprep.subr.bf16.mxu0 %v2975_v26  ;;  %v1632_v14 = vrot.slane %v1426_v48, %v4616_v17 }
 0x40c   : > { %2120 = vmatpush1.bf16.msra.mxu0 %v2973_v50  ;;  %v1427_v50 = vld [vmem:[%s4593_s7] sm:$0x3] }
 0x40d   : > { %2121 = vmatprep.subr.bf16.mxu0 %v2981_v35 }
 0x410   : > { %2122 = vmatpush1.bf16.msra.mxu0 %v2979_v23  ;;  %v1628_v23 = vrot.slane %v1426_v48, %v4615_v54  ;;  %v3090_v48 = vld [vmem:[%s4594_s8 + $0x2d0] ss:$8 sps:$4 sm:$0xff]  }
 0x411   : > { %2123 = vmatprep.subr.bf16.mxu0 %v2987_v52 }
 0x414   : > { %2124 = vmatpush1.bf16.msra.mxu0 %v2985_v59 }
 0x415   : > { %2125 = vmatprep.subr.bf16.mxu0 %v2993_v0  ;;  %v1641_v0 = vrot.slane %v1427_v50, %v4615_v54 }
 0x418   : > { %2126 = vmatpush1.bf16.msra.mxu0 %v2991_v5 }
 0x419   : > { %2127 = vmatprep.subr.bf16.mxu0 %v2999_v19 }
 0x41c   : > { %2128 = vmatpush1.bf16.msra.mxu0 %v2997_v20  ;;  %v1645_v20 = vrot.slane %v1427_v50, %v4616_v17  ;;  %v3093_v50 = vld [vmem:[%s4594_s8 + $0x2c0] ss:$8 sps:$4 sm:$0xff]  }
 0x41d   : > { %2129 = vmatprep.subr.bf16.mxu0 %v3005_v36 }
 0x420   : > { %2130 = vmatpush1.bf16.msra.mxu0 %v3003_v39 }
 0x421   : > { %2131 = vmatprep.subr.bf16.mxu0 %v3011_v51 }
 0x424   : > { %2132 = vmatpush2.bf16.msra.mxu0 %v3009_v53 }
 0x425   : > { %2133 = vmatprep.subr.bf16.mxu0 %v3017_v30 }
 0x428   : > { %2134 = vmatpush2.bf16.msra.mxu0 %v3015_v41 }
 0x429   : > { %2135 = vmatprep.subr.bf16.mxu0 %v3023_v32 }
 0x42c   : > { %2136 = vmatpush2.bf16.msra.mxu0 %v3021_v25 }
 0x42d   : > { %2137 = vmatprep.subr.bf16.mxu0 %v3029_v58 }
 0x430   : > { %2138 = vmatpush2.bf16.msra.mxu0 %v3027_v60 }
 0x431   : > { %2139 = vmatprep.subr.bf16.mxu0 %v3035_v63 }
 0x434   : > { %2140 = vmatpush2.bf16.msra.mxu0 %v3033_v1 }
 0x435   : > { %2141 = vmatprep.subr.bf16.mxu0 %v3041_v4 }
 0x438   : > { %2142 = vmatpush2.bf16.msra.mxu0 %v3039_v6  ;;  %v3065_v6 = vld [vmem:[%s4594_s8 + $0x264] ss:$8 sps:$4 sm:$0xff]  }
 0x439   : > { %2143 = vmatprep.subr.bf16.mxu0 %v3047_v10  ;;  %v3066_v10 = vld [vmem:[%s4594_s8 + $0x250] ss:$8 sps:$4 sm:$0xff]  }
 0x43c   : > { %2144 = vmatpush2.bf16.msra.mxu0 %v3045_v11  ;;  %v3068_v11 = vld [vmem:[%s4594_s8 + $0x254] ss:$8 sps:$4 sm:$0xff]  }
 0x43d   : > { %2145 = vmatprep.subr.bf16.mxu0 %v3053_v21  ;;  %v3074_v21 = vld [vmem:[%s4594_s8 + $0x234] ss:$8 sps:$4 sm:$0xff]  }
 0x440   : > { %2146 = vmatpush2.bf16.msra.mxu0 %v3051_v31  ;;  %v3077_v31 = vld [vmem:[%s4594_s8 + $0x224] ss:$8 sps:$4 sm:$0xff]  }
 0x4c3   : > { %v1603_v40 = vpop.f32.mrf.mxu0 }
 0x4c4   : > { %v1608_v42 = vmul.f32 0.001953125, %v1603_v40  ;;  %v3081_v40 = vld [vmem:[%s4594_s8 + $0x200] ss:$8 sps:$4 sm:$0xff]  }
 0x4c5   : > { %v1605_v43 = vpop.f32.mrf.mxu0 }
 0x4c6   : > { %v1610_v44 = vadd.f32 1e-05, %v1608_v42  ;;  %v1609_v46 = vmul.f32 0.001953125, %v1605_v43  ;;  %v3086_v42 = vld [vmem:[%s4594_s8 + $0x2f4] ss:$8 sps:$4 sm:$0xff]  }
 0x4c7   : > { %v3084_v43 = vld [vmem:[%s4594_s8 + $0x2f0] ss:$8 sps:$4 sm:$0xff]  }
 0x4c8   : > { %3112 = vrsqrt.f32 %v1610_v44  ;;  %v1611_v47 = vadd.f32 1e-05, %v1609_v46  ;;  %v3089_v44 = vld [vmem:[%s4594_s8 + $0x2e4] ss:$8 sps:$4 sm:$0xff]   ;;  %v3087_v46 = vld [vmem:[%s4594_s8 + $0x2e0] ss:$8 sps:$4 sm:$0xff]  }
 0x4ca   : > { %3114 = vrsqrt.f32 %v1611_v47  ;;  %v3092_v47 = vld [vmem:[%s4594_s8 + $0x2d4] ss:$8 sps:$4 sm:$0xff]  }
 0x4d5   : > { %v3113_v26 = vpop.eup %3112 }
 0x4d6   : > { %v1617_v35 = vrot.slane %v3113_v26, %v4615_v54  ;;  %v3095_v26 = vld [vmem:[%s4594_s8 + $0x2c4] ss:$8 sps:$4 sm:$0xff]  }
 0x4d7   : > { %v3115_v52 = vpop.eup %3114 }
 0x4d8   : > { %v1622_v59 = vmul.f32 %v1617_v35, %v4287_v9  ;;  %v1621_v5 = vrot.slane %v3115_v52, %v4615_v54  ;;  %v3098_v35 = vld [vmem:[%s4594_s8 + $0x2b4] ss:$8 sps:$4 sm:$0xff]   ;;  %v3101_v52 = vld [vmem:[%s4594_s8 + $0x2a4] ss:$8 sps:$4 sm:$0xff]  }
 0x4da   : > { %v1635_v12 = vmul.f32 %v1628_v23, %v1622_v59  ;;  %v1623_v19 = vmul.f32 %v1621_v5, %v4292_v27  ;;  %v3096_v23 = vld [vmem:[%s4594_s8 + $0x2b0] ss:$8 sps:$4 sm:$0xff]   ;;  %v3099_v59 = vld [vmem:[%s4594_s8 + $0x2a0] ss:$8 sps:$4 sm:$0xff]  }
 0x4db   : > { %v3102_v5 = vld [vmem:[%s4594_s8 + $0x290] ss:$8 sps:$4 sm:$0xff]  }
 0x4dc   : > { %v1648_v28 = vadd.f32 %v1641_v0, %v1635_v12  ;;  %v1636_v34 = vmul.f32 %v1632_v14, %v1623_v19  ;;  %v3104_v0 = vld [vmem:[%s4594_s8 + $0x294] ss:$8 sps:$4 sm:$0xff]   ;;  %v3107_v14 = vld [vmem:[%s4594_s8 + $0x284] ss:$8 sps:$4 sm:$0xff]  }
 0x4de   : > { %v1650_v36 = vmax.f32 %v1648_v28, 0.0  ;;  %v1649_v39 = vadd.f32 %v1645_v20, %v1636_v34  ;;  %v3105_v20 = vld [vmem:[%s4594_s8 + $0x280] ss:$8 sps:$4 sm:$0xff]  }
 0x4e0   : > { %v1655_v45 = vrot.slane %v1650_v36, 7  ;;  %v1651_v49 = vmax.f32 %v1649_v39, 0.0 }
 0x4e2   : > { %1659 = vst [vmem:[#allocation2] sm:$0xfe] %v1655_v45  ;;  %1661 = vst [vmem:[#allocation2 + $0x10] sm:$0x1] %v1655_v45  ;;  %v1656_v9 = vrot.slane %v1651_v49, 7 }
 0x4e4   : > { %1660 = vst [vmem:[#allocation2 + $0x8] sm:$0xfe] %v1656_v9  ;;  %1662 = vst [vmem:[#allocation2 + $0x18] sm:$0x1] %v1656_v9 }
 0x4e9   : > { %v1699_v51 = vld [vmem:[#allocation2] sm:$0xfe]  ;;  %v1701_v53 = vld [vmem:[#allocation2 + $0x10] sm:$0x1] }
 0x4ea   : > { %v1663_v13 = vld [vmem:[#allocation2] sm:$0xff]  ;;  %v1703_v22 = vpack.c.bf16 %v1701_v53, %v1699_v51  ;;  %v2158_v19 = vld [vmem:[#allocation2 + $0x10] sm:$0x3] }
 0x4eb   : > { %v1664_v30 = vld [vmem:[#allocation2 + $0x8] sm:$0xff]  ;;  %v1702_v27 = vld [vmem:[#allocation2 + $0x18] sm:$0x1]  ;;  %v1665_v25 = vpack.c.bf16 %v1663_v13, %v1663_v13  ;;  %v2156_v12 = vld [vmem:[#allocation2] sm:$0xfc] }
 0x4ec   : > { %v1700_v41 = vld [vmem:[#allocation2 + $0x8] sm:$0xfe]  ;;  %v1666_v55 = vpack.c.bf16 %v1664_v30, %v1664_v30  ;;  %v1741_v32 = vshll.u32 %v1703_v22, 16  ;;  %v2159_v57 = vld [vmem:[#allocation2 + $0x18] sm:$0x3]  ;;  %v1739_v1 = vshrl.u32 %v1703_v22, 16  ;;  %v2160_v28 = vpack.c.bf16 %v2158_v19, %v2156_v12 }
 0x4ed   : > { %v1704_v15 = vpack.c.bf16 %v1702_v27, %v1700_v41  ;;  %v2157_v56 = vld [vmem:[#allocation2 + $0x8] sm:$0xfc]  ;;  %v1652_v22 = vld [vmem:[%s4595_s9] sm:$0x3] }
 0x4ee   : > { %2147 = vmatprep.mubr.bf16.mxu0 %v1666_v55  ;;  %v1743_v60 = vrot.slane %v1741_v32, 1  ;;  %v2161_v63 = vpack.c.bf16 %v2159_v57, %v2157_v56  ;;  %v2197_v34 = vrot.slane %v2160_v28, 1  ;;  %v2408_v41 = vrot.slane %v1652_v22, %v4615_v54 }
 0x4ef   : > { %v1748_v58 = vshll.u32 %v1704_v15, 16  ;;  %2148 = vmatmul.mubr.bf16.vlgmr.msra.gmra.mxu0 %v1665_v25  ;;  %v1746_v61 = vshrl.u32 %v1704_v15, 16  ;;  %v2412_v32 = vrot.slane %v1652_v22, %v4616_v17  ;;  %v2417_v25 = vld [vmem:[%s3326_s24] sm:$0xff] }
 0x4f0   : > { %v1744_v4 = vor.u32 %v1743_v60, %v1739_v1  ;;  %v2198_v7 = vrot.slane %v2161_v63, 1  ;;  %v2418_v60 = vld [vmem:[%s3326_s24 + $0x8] sm:$0xff] }
 0x4f1   : > { %v1750_v62 = vrot.slane %v1748_v58, 1 }
 0x4f3   : > { %v1751_v2 = vor.u32 %v1750_v62, %v1746_v61 }
 0x4f5   : > { %1946 = vmatprep.mubr.bf16.mxu1 %v1751_v2 }
 0x4f6   : > { %1947 = vmatmul.mubr.bf16.vlgmr.msra.gmra.mxu1 %v1744_v4 }
 0x4f7   : > { %2362 = vmatpush1.bf16.msra.mxu1 %v3060_v3  ;;  %2393 = vmatprep.mubr.bf16.mxu1 %v2198_v7 }
 0x4f8   : > { %2363 = vmatprep.subr.bf16.mxu1 %v3065_v6 }
 0x4fb   : > { %2364 = vmatpush1.bf16.msra.mxu1 %v3063_v8 }
 0x4fc   : > { %2365 = vmatprep.subr.bf16.mxu1 %v3068_v11 }
 0x4ff   : > { %2366 = vmatpush1.bf16.msra.mxu1 %v3066_v10 }
 0x500   : > { %2367 = vmatprep.subr.bf16.mxu1 %v3071_v16 }
 0x503   : > { %2368 = vmatpush1.bf16.msra.mxu1 %v3069_v18 }
 0x504   : > { %2369 = vmatprep.subr.bf16.mxu1 %v3074_v21 }
 0x507   : > { %2370 = vmatpush1.bf16.msra.mxu1 %v3072_v29 }
 0x508   : > { %2371 = vmatprep.subr.bf16.mxu1 %v3077_v31 }
 0x50b   : > { %2372 = vmatpush1.bf16.msra.mxu1 %v3075_v33 }
 0x50c   : > { %2373 = vmatprep.subr.bf16.mxu1 %v3080_v37 }
 0x50f   : > { %2374 = vmatpush1.bf16.msra.mxu1 %v3078_v38 }
 0x510   : > { %2375 = vmatprep.subr.bf16.mxu1 %v3083_v24 }
 0x513   : > { %2376 = vmatpush1.bf16.msra.mxu1 %v3081_v40 }
 0x514   : > { %2377 = vmatprep.subr.bf16.mxu1 %v3086_v42 }
 0x517   : > { %2378 = vmatpush2.bf16.msra.mxu1 %v3084_v43 }
 0x518   : > { %2379 = vmatprep.subr.bf16.mxu1 %v3089_v44 }
 0x51b   : > { %2380 = vmatpush2.bf16.msra.mxu1 %v3087_v46 }
 0x51c   : > { %2381 = vmatprep.subr.bf16.mxu1 %v3092_v47 }
 0x51f   : > { %2382 = vmatpush2.bf16.msra.mxu1 %v3090_v48 }
 0x520   : > { %2383 = vmatprep.subr.bf16.mxu1 %v3095_v26 }
 0x523   : > { %2384 = vmatpush2.bf16.msra.mxu1 %v3093_v50 }
 0x524   : > { %2385 = vmatprep.subr.bf16.mxu1 %v3098_v35 }
 0x527   : > { %2386 = vmatpush2.bf16.msra.mxu1 %v3096_v23 }
 0x528   : > { %2387 = vmatprep.subr.bf16.mxu1 %v3101_v52 }
 0x52b   : > { %2388 = vmatpush2.bf16.msra.mxu1 %v3099_v59 }
 0x52c   : > { %2389 = vmatprep.subr.bf16.mxu1 %v3104_v0 }
 0x52f   : > { %2390 = vmatpush2.bf16.msra.mxu1 %v3102_v5 }
 0x530   : > { %2391 = vmatprep.subr.bf16.mxu1 %v3107_v14 }
 0x533   : > { %2392 = vmatpush2.bf16.msra.mxu1 %v3105_v20 }
 0x536   : > { %2394 = vmatmul.mubr.bf16.vlgmr.msra.gmra.mxu1 %v2197_v34 }
 0x5af   : > { %v2149_v36 = vpop.f32.mrf.mxu0 }
 0x5b1   : > { %v2151_v39 = vpop.f32.mrf.mxu0 }
 0x5b3   : > { %v2153_v45 = vpop.f32.mrf.mxu0 }
 0x5b5   : > { %v2154_v9 = vpop.f32.mrf.mxu0 }
 0x5b6   : > { %v1948_v49 = vpop.f32.mrf.mxu1 }
 0x5b7   : > { %v2150_v30 = vadd.f32 %v2149_v36, %v1948_v49 }
 0x5b8   : > { %v1950_v51 = vpop.f32.mrf.mxu1 }
 0x5b9   : > { %v2152_v55 = vadd.f32 %v2151_v39, %v1950_v51 }
 0x5ba   : > { %v1952_v53 = vpop.f32.mrf.mxu1 }
 0x5bc   : > { %v1953_v13 = vpop.f32.mrf.mxu1 }
 0x5f6   : > { %v2395_v27 = vpop.f32.mrf.mxu1 }
 0x5f7   : > { %v2402_v15 = vadd.f32 %v2395_v27, %v2150_v30 }
 0x5f8   : > { %v2397_v56 = vpop.f32.mrf.mxu1 }
 0x5f9   : > { %v2415_v57 = vadd.f32 %v2408_v41, %v2402_v15  ;;  %v2403_v58 = vadd.f32 %v2397_v56, %v2152_v55 }
 0x5fa   : > { %v2399_v61 = vpop.f32.mrf.mxu1 }
 0x5fb   : > { %v2419_v62 = vadd.f32 %v2417_v25, %v2415_v57  ;;  %v2416_v63 = vadd.f32 %v2412_v32, %v2403_v58 }
 0x5fc   : > { %v2400_v1 = vpop.f32.mrf.mxu1 }
 0x5fd   : > { %2421 = vst [vmem:[%s359_s27] sm:$0xff] %v2419_v62  ;;  %v2420_v54 = vadd.f32 %v2418_v60, %v2416_v63 }
 0x5ff   : > { %2422 = vst [vmem:[%s359_s27 + $0x8] sm:$0xff] %v2420_v54 }
 0x600 PF: > { %s20_s13 = sadd.s32 1, %s3185_s13  }
 0x601   : > { %p17_p4 = scmp.ge.s32.totalorder %s20_s13, 4  }
 0x603   :  { %19 = sbr.rel (!%p17_p4) target bundleno = 1 (0x1), region = 95 }

</bundles_post_ra>
